<compile_context>
chip_gen: v6e
topology: v6e:2x2x1
jax: 0.10.0
libtpu: 0.0.40
codegen_flags: <defaults>
</compile_context>

<pallas_src>
import functools

import jax
import jax.numpy as jnp
from jax.experimental import pallas as pl
from jax.experimental.pallas import tpu as pltpu

# GPTConfig defaults
N_EMBED = 96
N_HEADS = 6
HEAD_DIM = N_EMBED // N_HEADS        # 16
LANE = 128                           # TPU vreg lane width


def _round_up(x, m):
    return ((x + m - 1) // m) * m


def _attn_kernel(x_ref, wk_ref, bk_ref, wv_ref, bv_ref, wp_ref, bp_ref, o_ref,
                 *, n_heads, seq_len, n_embed):
    """Processes a (rows, 128) row block; rows = (batch slice) * seq_len."""
    R, EP = x_ref.shape                     # R = Bb*T rows, EP = 128 lanes
    T = seq_len
    Bb = R // T
    D = n_embed // n_heads
    scale = n_embed ** (-0.5)               # n_embed, not head_dim (module quirk)

    # Lane-dense load; pad lanes (>= n_embed) are zero and hit zero weight rows.
    x2d = x_ref[...].astype(jnp.bfloat16)                            # (R, 128)

    # Additive causal mask, built once per grid step (shared by all heads/batch).
    row = jax.lax.broadcasted_iota(jnp.int32, (T, T), 0)
    col = jax.lax.broadcasted_iota(jnp.int32, (T, T), 1)
    neg_mask = jnp.where(row >= col, 0.0, -1e30).astype(jnp.float32)  # (T, T)

    # Per-head contributions accumulate straight into the (R, 128) output slab
    # (no lane-axis concat of head outputs).
    acc = jnp.zeros((R, EP), jnp.float32)
    for h in range(n_heads):                # static unroll, n_heads = 6
        # Per-head projections: head-blocked weights on a leading axis, so no
        # lane slicing is needed anywhere.  q = k per the module's forward, so
        # there is no q projection at all.
        k2 = jnp.dot(x2d, wk_ref[h], preferred_element_type=jnp.float32) + bk_ref[h]
        v2 = jnp.dot(x2d, wv_ref[h], preferred_element_type=jnp.float32) + bv_ref[h]
        k3 = k2.astype(jnp.bfloat16).reshape(Bb, T, D)               # (Bb, T, D)
        v3 = v2.astype(jnp.bfloat16).reshape(Bb, T, D)

        # scores with q = k
        s = jnp.einsum('btd,bsd->bts', k3, k3,
                       preferred_element_type=jnp.float32)            # (Bb, T, T)
        s = s * scale + neg_mask[None]
        s = s - jnp.max(s, axis=-1, keepdims=True)
        p = jnp.exp(s)
        p = p * pl.reciprocal(jnp.sum(p, axis=-1, keepdims=True), approx=True)

        o_h = jnp.einsum('bts,bsd->btd', p.astype(jnp.bfloat16), v3,
                         preferred_element_type=jnp.float32)          # (Bb, T, D)

        # acc += o_h @ Wp[h*D:(h+1)*D, :]   (wp_ref pre-blocked (H, D, 128))
        acc = acc + jnp.dot(o_h.reshape(R, D).astype(jnp.bfloat16), wp_ref[h],
                            preferred_element_type=jnp.float32)

    # Unmasked full-128-lane store (pad lanes carry zeros; stripped in wrapper).
    o_ref[...] = (acc + bp_ref[...]).astype(o_ref.dtype)


def prepare_params(wa, ba, wp, bp, *, n_heads=N_HEADS):
    """One-time weight preprocessing (hoisted out of the per-forward path).

    wa: (E, 3E) c_attn weight (x @ wa layout);  ba: (1, 3E) c_attn bias
    wp: (E, E)  c_proj weight;                  bp: (1, E)  c_proj bias
    Returns a dict of device arrays only (safe to jit / cache).
    """
    E = wa.shape[0]
    D = E // n_heads
    EP = _round_up(E, LANE)

    # q = k in the reference forward: the Wq / bq third of c_attn is dead -> drop it.
    wk = wa[:, E:2 * E]                      # (E, E)
    wv = wa[:, 2 * E:3 * E]                  # (E, E)
    bk = ba[0, E:2 * E]                      # (E,)
    bv = ba[0, 2 * E:3 * E]                  # (E,)

    def head_block(w):                       # (E, E) -> (H, EP, D); zero-pad input rows
        w_h = w.reshape(E, n_heads, D).transpose(1, 0, 2)            # (H, E, D)
        return jnp.pad(w_h, ((0, 0), (0, EP - E), (0, 0))).astype(jnp.bfloat16)

    wk_h = head_block(wk)                    # (H, 128, D) bf16
    wv_h = head_block(wv)                    # (H, 128, D) bf16
    bk_h = bk.reshape(n_heads, 1, D).astype(jnp.float32)             # (H, 1, D)
    bv_h = bv.reshape(n_heads, 1, D).astype(jnp.float32)             # (H, 1, D)

    # c_proj: row-blocked by head, output lanes padded to 128 so the kernel's
    # accumulator and store are full-lane-width slabs.
    wp_h = jnp.pad(wp.reshape(n_heads, D, E),
                   ((0, 0), (0, 0), (0, EP - E))).astype(jnp.bfloat16)  # (H, D, 128)
    bp_p = jnp.pad(bp.astype(jnp.float32), ((0, 0), (0, EP - E)))       # (1, 128)

    return dict(wk_h=wk_h, bk_h=bk_h, wv_h=wv_h, bv_h=bv_h, wp_h=wp_h, bp_p=bp_p)


def causal_self_attention(x, params, *, block_rows=None):
    """x: (B, T, E); params: output of prepare_params (already preprocessed)."""
    B, T, E = x.shape
    wk_h = params['wk_h']
    H, EP, D = wk_h.shape
    assert H * D == E
    R = B * T

    # Lane-dense input rows: (B*T, 128) with zeros in lanes E..127 (cheap, per-call).
    x2 = jnp.pad(x.reshape(R, E), ((0, 0), (0, EP - E)))

    if block_rows is None:
        # Split across the two v7x TensorCores only when each half is large enough
        # to amortize per-step pipeline overhead (~0.35us) + duplicate weight DMA.
        half = R // 2
        if R % 2 == 0 and half % T == 0 and half % 8 == 0 and half >= 512:
            block_rows = half
        else:
            block_rows = R
    assert R % block_rows == 0 and block_rows % T == 0

    grid_steps = R // block_rows

    def weight_spec(shape):
        nd = len(shape)
        idx_map = lambda r, _nd=nd: (0,) * _nd
        if grid_steps > 1:
            # Constant index across the grid: nothing to double-buffer.
            return pl.BlockSpec(shape, idx_map, pipeline_mode=pl.Buffered(1))
        return pl.BlockSpec(shape, idx_map)

    kernel = functools.partial(_attn_kernel, n_heads=H, seq_len=T, n_embed=E)
    out_pad = pl.pallas_call(
        kernel,
        out_shape=jax.ShapeDtypeStruct((R, EP), x.dtype),
        grid=(grid_steps,),
        in_specs=[
            pl.BlockSpec((block_rows, EP), lambda r: (r, 0)),   # x rows (lane-dense)
            weight_spec((H, EP, D)),                            # Wk per head (bf16)
            weight_spec((H, 1, D)),                             # bk per head
            weight_spec((H, EP, D)),                            # Wv per head (bf16)
            weight_spec((H, 1, D)),                             # bv per head
            weight_spec((H, D, EP)),                            # Wp per head (bf16)
            weight_spec((1, EP)),                               # bp (lane-padded)
        ],
        out_specs=pl.BlockSpec((block_rows, EP), lambda r: (r, 0)),
        compiler_params=pltpu.CompilerParams(
            dimension_semantics=("parallel",),
            vmem_limit_bytes=32 * 1024 * 1024,
        ),
    )(x2, params['wk_h'], params['bk_h'], params['wv_h'], params['bv_h'],
      params['wp_h'], params['bp_p'])

    return out_pad[:, :E].reshape(B, T, E)


def _reference(x, wa, ba, wp, bp):
    """Pure-JAX f32 reference mirroring the PyTorch forward (incl. the q=k bug)."""
    B, T, E = x.shape
    qkv = x @ wa + ba[0]
    k = qkv[..., E:2 * E]
    v = qkv[..., 2 * E:3 * E]
    q = k

    def split_heads(t):
        return t.reshape(B, T, N_HEADS, HEAD_DIM).transpose(0, 2, 1, 3)

    q, k, v = split_heads(q), split_heads(k), split_heads(v)
    attn = jnp.einsum("bhtd,bhsd->bhts", q, k) * (E ** -0.5)
    mask = jnp.tril(jnp.ones((T, T), dtype=bool))
    attn = jnp.where(mask[None, None], attn, -jnp.inf)
    attn = jax.nn.softmax(attn, axis=-1)
    out = jnp.einsum("bhts,bhsd->bhtd", attn, v)
    out = out.transpose(0, 2, 1, 3).reshape(B, T, E)
    return out @ wp + bp[0]


if __name__ == "__main__":
    key = jax.random.PRNGKey(0)
    k_x, k_wa, k_ba, k_wp, k_bp = jax.random.split(key, 5)

    B, T = 4, 8                              # x = torch.randn(4, 8, n_embed) in the spec
    x = jax.random.normal(k_x, (B, T, N_EMBED), dtype=jnp.float32)

    # deterministic Linear-style init (uniform in +/- 1/sqrt(fan_in)), stored as (in, out)
    bound = 1.0 / (N_EMBED ** 0.5)
    wa = jax.random.uniform(k_wa, (N_EMBED, 3 * N_EMBED), jnp.float32, -bound, bound)
    ba = jax.random.uniform(k_ba, (1, 3 * N_EMBED), jnp.float32, -bound, bound)
    wp = jax.random.uniform(k_wp, (N_EMBED, N_EMBED), jnp.float32, -bound, bound)
    bp = jax.random.uniform(k_bp, (1, N_EMBED), jnp.float32, -bound, bound)

    params = prepare_params(wa, ba, wp, bp)      # one-time, hoisted weight prep
    out = causal_self_attention(x, params)
    out = jax.block_until_ready(out)

    ref = _reference(x, wa, ba, wp, bp)
    assert out.shape == (B, T, N_EMBED)
    # bf16 MXU operands w/ f32 accumulation + approx reciprocal -> modest tolerance.
    assert jnp.allclose(out, ref, rtol=3e-2, atol=3e-2), "mismatch vs pure-JAX reference"

    print("KERNEL_OK")
</pallas_src>

<mosaic_0001>
module attributes {stable_mosaic.version = 11 : i64} {
  func.func @_attn_kernel(%arg0: i32, %arg1: memref<32x128xf32, #tpu.memory_space<vmem>>, %arg2: memref<6x128x16xbf16, #tpu.memory_space<vmem>>, %arg3: memref<6x1x16xf32, #tpu.memory_space<vmem>>, %arg4: memref<6x128x16xbf16, #tpu.memory_space<vmem>>, %arg5: memref<6x1x16xf32, #tpu.memory_space<vmem>>, %arg6: memref<6x16x128xbf16, #tpu.memory_space<vmem>>, %arg7: memref<1x128xf32, #tpu.memory_space<vmem>>, %arg8: memref<32x128xf32, #tpu.memory_space<vmem>>) attributes {dimension_semantics = [#tpu.dimension_semantics<parallel>], iteration_bounds = array<i64: 1>, scalar_prefetch = 0 : i64, scratch_operands = 0 : i64, tpu.core_type = #tpu.core_type<tc>, window_params = [{transform_indices = @transform_0, window_bounds = array<i64: 32, 128>}, {pipeline_mode = #tpu.pipeline_mode<synchronous>, transform_indices = @transform_1, window_bounds = array<i64: 6, 128, 16>}, {pipeline_mode = #tpu.pipeline_mode<synchronous>, transform_indices = @transform_2, window_bounds = array<i64: 6, 1, 16>}, {pipeline_mode = #tpu.pipeline_mode<synchronous>, transform_indices = @transform_3, window_bounds = array<i64: 6, 128, 16>}, {pipeline_mode = #tpu.pipeline_mode<synchronous>, transform_indices = @transform_4, window_bounds = array<i64: 6, 1, 16>}, {pipeline_mode = #tpu.pipeline_mode<synchronous>, transform_indices = @transform_5, window_bounds = array<i64: 6, 16, 128>}, {pipeline_mode = #tpu.pipeline_mode<synchronous>, transform_indices = @transform_6, window_bounds = array<i64: 1, 128>}, {transform_indices = @transform_7, window_bounds = array<i64: 32, 128>}]} {
    %c0 = arith.constant 0 : index
    %c0_0 = arith.constant 0 : index
    %0 = vector.load %arg1[%c0, %c0_0] : memref<32x128xf32, #tpu.memory_space<vmem>>, vector<32x128xf32>
    %1 = arith.truncf %0 : vector<32x128xf32> to vector<32x128xbf16>
    %2 = tpu.iota {dimensions = array<i32: 0>} : vector<8x8xi32>
    %3 = tpu.iota {dimensions = array<i32: 1>} : vector<8x8xi32>
    %4 = arith.cmpi sge, %2, %3 : vector<8x8xi32>
    %cst = arith.constant 0.000000e+00 : f32
    %cst_1 = arith.constant -1.000000e+30 : f32
    %5 = vector.broadcast %cst : f32 to vector<8x8xf32>
    %6 = vector.broadcast %cst_1 : f32 to vector<8x8xf32>
    %7 = arith.select %4, %5, %6 : vector<8x8xi1>, vector<8x8xf32>
    %cst_2 = arith.constant 0.000000e+00 : f32
    %8 = vector.broadcast %cst_2 : f32 to vector<32x128xf32>
    %c0_3 = arith.constant 0 : index
    %c0_4 = arith.constant 0 : index
    %c0_5 = arith.constant 0 : index
    %9 = vector.load %arg2[%c0_3, %c0_4, %c0_5] : memref<6x128x16xbf16, #tpu.memory_space<vmem>>, vector<1x128x16xbf16>
    %10 = vector.shape_cast %9 : vector<1x128x16xbf16> to vector<128x16xbf16>
    %cst_6 = arith.constant dense<0.000000e+00> : vector<32x16xf32>
    %11 = tpu.matmul %1, %10, %cst_6 {dimension_numbers = #tpu.dot_dimension_numbers<[1], [0], [0], [1], [0, 0, 1, 1], [], []>} : vector<32x128xbf16>, vector<128x16xbf16>, vector<32x16xf32> -> vector<32x16xf32>
    %c0_7 = arith.constant 0 : index
    %c0_8 = arith.constant 0 : index
    %c0_9 = arith.constant 0 : index
    %12 = vector.load %arg3[%c0_7, %c0_8, %c0_9] : memref<6x1x16xf32, #tpu.memory_space<vmem>>, vector<1x1x16xf32>
    %13 = vector.shape_cast %12 : vector<1x1x16xf32> to vector<1x16xf32>
    %14 = vector.broadcast %13 : vector<1x16xf32> to vector<32x16xf32>
    %15 = arith.addf %11, %14 : vector<32x16xf32>
    %c0_10 = arith.constant 0 : index
    %c0_11 = arith.constant 0 : index
    %c0_12 = arith.constant 0 : index
    %16 = vector.load %arg4[%c0_10, %c0_11, %c0_12] : memref<6x128x16xbf16, #tpu.memory_space<vmem>>, vector<1x128x16xbf16>
    %17 = vector.shape_cast %16 : vector<1x128x16xbf16> to vector<128x16xbf16>
    %cst_13 = arith.constant dense<0.000000e+00> : vector<32x16xf32>
    %18 = tpu.matmul %1, %17, %cst_13 {dimension_numbers = #tpu.dot_dimension_numbers<[1], [0], [0], [1], [0, 0, 1, 1], [], []>} : vector<32x128xbf16>, vector<128x16xbf16>, vector<32x16xf32> -> vector<32x16xf32>
    %c0_14 = arith.constant 0 : index
    %c0_15 = arith.constant 0 : index
    %c0_16 = arith.constant 0 : index
    %19 = vector.load %arg5[%c0_14, %c0_15, %c0_16] : memref<6x1x16xf32, #tpu.memory_space<vmem>>, vector<1x1x16xf32>
    %20 = vector.shape_cast %19 : vector<1x1x16xf32> to vector<1x16xf32>
    %21 = vector.broadcast %20 : vector<1x16xf32> to vector<32x16xf32>
    %22 = arith.addf %18, %21 : vector<32x16xf32>
    %23 = arith.truncf %15 : vector<32x16xf32> to vector<32x16xbf16>
    %24 = vector.shape_cast %23 : vector<32x16xbf16> to vector<4x8x16xbf16>
    %25 = arith.truncf %22 : vector<32x16xf32> to vector<32x16xbf16>
    %26 = vector.shape_cast %25 : vector<32x16xbf16> to vector<4x8x16xbf16>
    "tpu.trace_start"() <{level = 10 : i32, message = "btd,bsd->bts"}> : () -> ()
    %cst_17 = arith.constant dense<0.000000e+00> : vector<4x8x8xf32>
    %27 = tpu.matmul %24, %24, %cst_17 {dimension_numbers = #tpu.dot_dimension_numbers<[2], [2], [1], [1], [0, 0, 0, 1, 1, 1], [0], [0]>} : vector<4x8x16xbf16>, vector<4x8x16xbf16>, vector<4x8x8xf32> -> vector<4x8x8xf32>
    "tpu.trace_stop"() : () -> ()
    %cst_18 = arith.constant 0.102062076 : f32
    %28 = vector.broadcast %cst_18 : f32 to vector<4x8x8xf32>
    %29 = arith.mulf %27, %28 : vector<4x8x8xf32>
    %30 = vector.shape_cast %7 : vector<8x8xf32> to vector<1x8x8xf32>
    %31 = vector.broadcast %30 : vector<1x8x8xf32> to vector<4x8x8xf32>
    %32 = arith.addf %29, %31 : vector<4x8x8xf32>
    %cst_19 = arith.constant dense<0xFF800000> : vector<4x8xf32>
    %33 = vector.multi_reduction <maximumf>, %32, %cst_19 [2] : vector<4x8x8xf32> to vector<4x8xf32>
    %34 = vector.shape_cast %33 : vector<4x8xf32> to vector<4x8x1xf32>
    %35 = vector.broadcast %34 : vector<4x8x1xf32> to vector<4x8x8xf32>
    %36 = arith.subf %32, %35 : vector<4x8x8xf32>
    %37 = math.exp %36 : vector<4x8x8xf32>
    %cst_20 = arith.constant dense<0.000000e+00> : vector<4x8xf32>
    %38 = vector.multi_reduction <add>, %37, %cst_20 [2] : vector<4x8x8xf32> to vector<4x8xf32>
    %39 = vector.shape_cast %38 : vector<4x8xf32> to vector<4x8x1xf32>
    %40 = tpu.reciprocal %39 {approx = true} : vector<4x8x1xf32> -> vector<4x8x1xf32>
    %41 = vector.broadcast %40 : vector<4x8x1xf32> to vector<4x8x8xf32>
    %42 = arith.mulf %37, %41 : vector<4x8x8xf32>
    %43 = arith.truncf %42 : vector<4x8x8xf32> to vector<4x8x8xbf16>
    "tpu.trace_start"() <{level = 10 : i32, message = "bts,bsd->btd"}> : () -> ()
    %cst_21 = arith.constant dense<0.000000e+00> : vector<4x8x16xf32>
    %44 = tpu.matmul %43, %26, %cst_21 {dimension_numbers = #tpu.dot_dimension_numbers<[2], [1], [1], [2], [0, 0, 0, 1, 1, 2], [0], [0]>} : vector<4x8x8xbf16>, vector<4x8x16xbf16>, vector<4x8x16xf32> -> vector<4x8x16xf32>
    "tpu.trace_stop"() : () -> ()
    %45 = vector.shape_cast %44 : vector<4x8x16xf32> to vector<32x16xf32>
    %46 = arith.truncf %45 : vector<32x16xf32> to vector<32x16xbf16>
    %c0_22 = arith.constant 0 : index
    %c0_23 = arith.constant 0 : index
    %c0_24 = arith.constant 0 : index
    %47 = vector.load %arg6[%c0_22, %c0_23, %c0_24] : memref<6x16x128xbf16, #tpu.memory_space<vmem>>, vector<1x16x128xbf16>
    %48 = vector.shape_cast %47 : vector<1x16x128xbf16> to vector<16x128xbf16>
    %cst_25 = arith.constant dense<0.000000e+00> : vector<32x128xf32>
    %49 = tpu.matmul %46, %48, %cst_25 {dimension_numbers = #tpu.dot_dimension_numbers<[1], [0], [0], [1], [0, 0, 1, 1], [], []>} : vector<32x16xbf16>, vector<16x128xbf16>, vector<32x128xf32> -> vector<32x128xf32>
    %50 = arith.addf %8, %49 : vector<32x128xf32>
    %c1 = arith.constant 1 : index
    %c0_26 = arith.constant 0 : index
    %c0_27 = arith.constant 0 : index
    %51 = vector.load %arg2[%c1, %c0_26, %c0_27] : memref<6x128x16xbf16, #tpu.memory_space<vmem>>, vector<1x128x16xbf16>
    %52 = vector.shape_cast %51 : vector<1x128x16xbf16> to vector<128x16xbf16>
    %cst_28 = arith.constant dense<0.000000e+00> : vector<32x16xf32>
    %53 = tpu.matmul %1, %52, %cst_28 {dimension_numbers = #tpu.dot_dimension_numbers<[1], [0], [0], [1], [0, 0, 1, 1], [], []>} : vector<32x128xbf16>, vector<128x16xbf16>, vector<32x16xf32> -> vector<32x16xf32>
    %c1_29 = arith.constant 1 : index
    %c0_30 = arith.constant 0 : index
    %c0_31 = arith.constant 0 : index
    %54 = vector.load %arg3[%c1_29, %c0_30, %c0_31] : memref<6x1x16xf32, #tpu.memory_space<vmem>>, vector<1x1x16xf32>
    %55 = vector.shape_cast %54 : vector<1x1x16xf32> to vector<1x16xf32>
    %56 = vector.broadcast %55 : vector<1x16xf32> to vector<32x16xf32>
    %57 = arith.addf %53, %56 : vector<32x16xf32>
    %c1_32 = arith.constant 1 : index
    %c0_33 = arith.constant 0 : index
    %c0_34 = arith.constant 0 : index
    %58 = vector.load %arg4[%c1_32, %c0_33, %c0_34] : memref<6x128x16xbf16, #tpu.memory_space<vmem>>, vector<1x128x16xbf16>
    %59 = vector.shape_cast %58 : vector<1x128x16xbf16> to vector<128x16xbf16>
    %cst_35 = arith.constant dense<0.000000e+00> : vector<32x16xf32>
    %60 = tpu.matmul %1, %59, %cst_35 {dimension_numbers = #tpu.dot_dimension_numbers<[1], [0], [0], [1], [0, 0, 1, 1], [], []>} : vector<32x128xbf16>, vector<128x16xbf16>, vector<32x16xf32> -> vector<32x16xf32>
    %c1_36 = arith.constant 1 : index
    %c0_37 = arith.constant 0 : index
    %c0_38 = arith.constant 0 : index
    %61 = vector.load %arg5[%c1_36, %c0_37, %c0_38] : memref<6x1x16xf32, #tpu.memory_space<vmem>>, vector<1x1x16xf32>
    %62 = vector.shape_cast %61 : vector<1x1x16xf32> to vector<1x16xf32>
    %63 = vector.broadcast %62 : vector<1x16xf32> to vector<32x16xf32>
    %64 = arith.addf %60, %63 : vector<32x16xf32>
    %65 = arith.truncf %57 : vector<32x16xf32> to vector<32x16xbf16>
    %66 = vector.shape_cast %65 : vector<32x16xbf16> to vector<4x8x16xbf16>
    %67 = arith.truncf %64 : vector<32x16xf32> to vector<32x16xbf16>
    %68 = vector.shape_cast %67 : vector<32x16xbf16> to vector<4x8x16xbf16>
    "tpu.trace_start"() <{level = 10 : i32, message = "btd,bsd->bts"}> : () -> ()
    %cst_39 = arith.constant dense<0.000000e+00> : vector<4x8x8xf32>
    %69 = tpu.matmul %66, %66, %cst_39 {dimension_numbers = #tpu.dot_dimension_numbers<[2], [2], [1], [1], [0, 0, 0, 1, 1, 1], [0], [0]>} : vector<4x8x16xbf16>, vector<4x8x16xbf16>, vector<4x8x8xf32> -> vector<4x8x8xf32>
    "tpu.trace_stop"() : () -> ()
    %cst_40 = arith.constant 0.102062076 : f32
    %70 = vector.broadcast %cst_40 : f32 to vector<4x8x8xf32>
    %71 = arith.mulf %69, %70 : vector<4x8x8xf32>
    %72 = vector.shape_cast %7 : vector<8x8xf32> to vector<1x8x8xf32>
    %73 = vector.broadcast %72 : vector<1x8x8xf32> to vector<4x8x8xf32>
    %74 = arith.addf %71, %73 : vector<4x8x8xf32>
    %cst_41 = arith.constant dense<0xFF800000> : vector<4x8xf32>
    %75 = vector.multi_reduction <maximumf>, %74, %cst_41 [2] : vector<4x8x8xf32> to vector<4x8xf32>
    %76 = vector.shape_cast %75 : vector<4x8xf32> to vector<4x8x1xf32>
    %77 = vector.broadcast %76 : vector<4x8x1xf32> to vector<4x8x8xf32>
    %78 = arith.subf %74, %77 : vector<4x8x8xf32>
    %79 = math.exp %78 : vector<4x8x8xf32>
    %cst_42 = arith.constant dense<0.000000e+00> : vector<4x8xf32>
    %80 = vector.multi_reduction <add>, %79, %cst_42 [2] : vector<4x8x8xf32> to vector<4x8xf32>
    %81 = vector.shape_cast %80 : vector<4x8xf32> to vector<4x8x1xf32>
    %82 = tpu.reciprocal %81 {approx = true} : vector<4x8x1xf32> -> vector<4x8x1xf32>
    %83 = vector.broadcast %82 : vector<4x8x1xf32> to vector<4x8x8xf32>
    %84 = arith.mulf %79, %83 : vector<4x8x8xf32>
    %85 = arith.truncf %84 : vector<4x8x8xf32> to vector<4x8x8xbf16>
    "tpu.trace_start"() <{level = 10 : i32, message = "bts,bsd->btd"}> : () -> ()
    %cst_43 = arith.constant dense<0.000000e+00> : vector<4x8x16xf32>
    %86 = tpu.matmul %85, %68, %cst_43 {dimension_numbers = #tpu.dot_dimension_numbers<[2], [1], [1], [2], [0, 0, 0, 1, 1, 2], [0], [0]>} : vector<4x8x8xbf16>, vector<4x8x16xbf16>, vector<4x8x16xf32> -> vector<4x8x16xf32>
    "tpu.trace_stop"() : () -> ()
    %87 = vector.shape_cast %86 : vector<4x8x16xf32> to vector<32x16xf32>
    %88 = arith.truncf %87 : vector<32x16xf32> to vector<32x16xbf16>
    %c1_44 = arith.constant 1 : index
    %c0_45 = arith.constant 0 : index
    %c0_46 = arith.constant 0 : index
    %89 = vector.load %arg6[%c1_44, %c0_45, %c0_46] : memref<6x16x128xbf16, #tpu.memory_space<vmem>>, vector<1x16x128xbf16>
    %90 = vector.shape_cast %89 : vector<1x16x128xbf16> to vector<16x128xbf16>
    %cst_47 = arith.constant dense<0.000000e+00> : vector<32x128xf32>
    %91 = tpu.matmul %88, %90, %cst_47 {dimension_numbers = #tpu.dot_dimension_numbers<[1], [0], [0], [1], [0, 0, 1, 1], [], []>} : vector<32x16xbf16>, vector<16x128xbf16>, vector<32x128xf32> -> vector<32x128xf32>
    %92 = arith.addf %50, %91 : vector<32x128xf32>
    %c2 = arith.constant 2 : index
    %c0_48 = arith.constant 0 : index
    %c0_49 = arith.constant 0 : index
    %93 = vector.load %arg2[%c2, %c0_48, %c0_49] : memref<6x128x16xbf16, #tpu.memory_space<vmem>>, vector<1x128x16xbf16>
    %94 = vector.shape_cast %93 : vector<1x128x16xbf16> to vector<128x16xbf16>
    %cst_50 = arith.constant dense<0.000000e+00> : vector<32x16xf32>
    %95 = tpu.matmul %1, %94, %cst_50 {dimension_numbers = #tpu.dot_dimension_numbers<[1], [0], [0], [1], [0, 0, 1, 1], [], []>} : vector<32x128xbf16>, vector<128x16xbf16>, vector<32x16xf32> -> vector<32x16xf32>
    %c2_51 = arith.constant 2 : index
    %c0_52 = arith.constant 0 : index
    %c0_53 = arith.constant 0 : index
    %96 = vector.load %arg3[%c2_51, %c0_52, %c0_53] : memref<6x1x16xf32, #tpu.memory_space<vmem>>, vector<1x1x16xf32>
    %97 = vector.shape_cast %96 : vector<1x1x16xf32> to vector<1x16xf32>
    %98 = vector.broadcast %97 : vector<1x16xf32> to vector<32x16xf32>
    %99 = arith.addf %95, %98 : vector<32x16xf32>
    %c2_54 = arith.constant 2 : index
    %c0_55 = arith.constant 0 : index
    %c0_56 = arith.constant 0 : index
    %100 = vector.load %arg4[%c2_54, %c0_55, %c0_56] : memref<6x128x16xbf16, #tpu.memory_space<vmem>>, vector<1x128x16xbf16>
    %101 = vector.shape_cast %100 : vector<1x128x16xbf16> to vector<128x16xbf16>
    %cst_57 = arith.constant dense<0.000000e+00> : vector<32x16xf32>
    %102 = tpu.matmul %1, %101, %cst_57 {dimension_numbers = #tpu.dot_dimension_numbers<[1], [0], [0], [1], [0, 0, 1, 1], [], []>} : vector<32x128xbf16>, vector<128x16xbf16>, vector<32x16xf32> -> vector<32x16xf32>
    %c2_58 = arith.constant 2 : index
    %c0_59 = arith.constant 0 : index
    %c0_60 = arith.constant 0 : index
    %103 = vector.load %arg5[%c2_58, %c0_59, %c0_60] : memref<6x1x16xf32, #tpu.memory_space<vmem>>, vector<1x1x16xf32>
    %104 = vector.shape_cast %103 : vector<1x1x16xf32> to vector<1x16xf32>
    %105 = vector.broadcast %104 : vector<1x16xf32> to vector<32x16xf32>
    %106 = arith.addf %102, %105 : vector<32x16xf32>
    %107 = arith.truncf %99 : vector<32x16xf32> to vector<32x16xbf16>
    %108 = vector.shape_cast %107 : vector<32x16xbf16> to vector<4x8x16xbf16>
    %109 = arith.truncf %106 : vector<32x16xf32> to vector<32x16xbf16>
    %110 = vector.shape_cast %109 : vector<32x16xbf16> to vector<4x8x16xbf16>
    "tpu.trace_start"() <{level = 10 : i32, message = "btd,bsd->bts"}> : () -> ()
    %cst_61 = arith.constant dense<0.000000e+00> : vector<4x8x8xf32>
    %111 = tpu.matmul %108, %108, %cst_61 {dimension_numbers = #tpu.dot_dimension_numbers<[2], [2], [1], [1], [0, 0, 0, 1, 1, 1], [0], [0]>} : vector<4x8x16xbf16>, vector<4x8x16xbf16>, vector<4x8x8xf32> -> vector<4x8x8xf32>
    "tpu.trace_stop"() : () -> ()
    %cst_62 = arith.constant 0.102062076 : f32
    %112 = vector.broadcast %cst_62 : f32 to vector<4x8x8xf32>
    %113 = arith.mulf %111, %112 : vector<4x8x8xf32>
    %114 = vector.shape_cast %7 : vector<8x8xf32> to vector<1x8x8xf32>
    %115 = vector.broadcast %114 : vector<1x8x8xf32> to vector<4x8x8xf32>
    %116 = arith.addf %113, %115 : vector<4x8x8xf32>
    %cst_63 = arith.constant dense<0xFF800000> : vector<4x8xf32>
    %117 = vector.multi_reduction <maximumf>, %116, %cst_63 [2] : vector<4x8x8xf32> to vector<4x8xf32>
    %118 = vector.shape_cast %117 : vector<4x8xf32> to vector<4x8x1xf32>
    %119 = vector.broadcast %118 : vector<4x8x1xf32> to vector<4x8x8xf32>
    %120 = arith.subf %116, %119 : vector<4x8x8xf32>
    %121 = math.exp %120 : vector<4x8x8xf32>
    %cst_64 = arith.constant dense<0.000000e+00> : vector<4x8xf32>
    %122 = vector.multi_reduction <add>, %121, %cst_64 [2] : vector<4x8x8xf32> to vector<4x8xf32>
    %123 = vector.shape_cast %122 : vector<4x8xf32> to vector<4x8x1xf32>
    %124 = tpu.reciprocal %123 {approx = true} : vector<4x8x1xf32> -> vector<4x8x1xf32>
    %125 = vector.broadcast %124 : vector<4x8x1xf32> to vector<4x8x8xf32>
    %126 = arith.mulf %121, %125 : vector<4x8x8xf32>
    %127 = arith.truncf %126 : vector<4x8x8xf32> to vector<4x8x8xbf16>
    "tpu.trace_start"() <{level = 10 : i32, message = "bts,bsd->btd"}> : () -> ()
    %cst_65 = arith.constant dense<0.000000e+00> : vector<4x8x16xf32>
    %128 = tpu.matmul %127, %110, %cst_65 {dimension_numbers = #tpu.dot_dimension_numbers<[2], [1], [1], [2], [0, 0, 0, 1, 1, 2], [0], [0]>} : vector<4x8x8xbf16>, vector<4x8x16xbf16>, vector<4x8x16xf32> -> vector<4x8x16xf32>
    "tpu.trace_stop"() : () -> ()
    %129 = vector.shape_cast %128 : vector<4x8x16xf32> to vector<32x16xf32>
    %130 = arith.truncf %129 : vector<32x16xf32> to vector<32x16xbf16>
    %c2_66 = arith.constant 2 : index
    %c0_67 = arith.constant 0 : index
    %c0_68 = arith.constant 0 : index
    %131 = vector.load %arg6[%c2_66, %c0_67, %c0_68] : memref<6x16x128xbf16, #tpu.memory_space<vmem>>, vector<1x16x128xbf16>
    %132 = vector.shape_cast %131 : vector<1x16x128xbf16> to vector<16x128xbf16>
    %cst_69 = arith.constant dense<0.000000e+00> : vector<32x128xf32>
    %133 = tpu.matmul %130, %132, %cst_69 {dimension_numbers = #tpu.dot_dimension_numbers<[1], [0], [0], [1], [0, 0, 1, 1], [], []>} : vector<32x16xbf16>, vector<16x128xbf16>, vector<32x128xf32> -> vector<32x128xf32>
    %134 = arith.addf %92, %133 : vector<32x128xf32>
    %c3 = arith.constant 3 : index
    %c0_70 = arith.constant 0 : index
    %c0_71 = arith.constant 0 : index
    %135 = vector.load %arg2[%c3, %c0_70, %c0_71] : memref<6x128x16xbf16, #tpu.memory_space<vmem>>, vector<1x128x16xbf16>
    %136 = vector.shape_cast %135 : vector<1x128x16xbf16> to vector<128x16xbf16>
    %cst_72 = arith.constant dense<0.000000e+00> : vector<32x16xf32>
    %137 = tpu.matmul %1, %136, %cst_72 {dimension_numbers = #tpu.dot_dimension_numbers<[1], [0], [0], [1], [0, 0, 1, 1], [], []>} : vector<32x128xbf16>, vector<128x16xbf16>, vector<32x16xf32> -> vector<32x16xf32>
    %c3_73 = arith.constant 3 : index
    %c0_74 = arith.constant 0 : index
    %c0_75 = arith.constant 0 : index
    %138 = vector.load %arg3[%c3_73, %c0_74, %c0_75] : memref<6x1x16xf32, #tpu.memory_space<vmem>>, vector<1x1x16xf32>
    %139 = vector.shape_cast %138 : vector<1x1x16xf32> to vector<1x16xf32>
    %140 = vector.broadcast %139 : vector<1x16xf32> to vector<32x16xf32>
    %141 = arith.addf %137, %140 : vector<32x16xf32>
    %c3_76 = arith.constant 3 : index
    %c0_77 = arith.constant 0 : index
    %c0_78 = arith.constant 0 : index
    %142 = vector.load %arg4[%c3_76, %c0_77, %c0_78] : memref<6x128x16xbf16, #tpu.memory_space<vmem>>, vector<1x128x16xbf16>
    %143 = vector.shape_cast %142 : vector<1x128x16xbf16> to vector<128x16xbf16>
    %cst_79 = arith.constant dense<0.000000e+00> : vector<32x16xf32>
    %144 = tpu.matmul %1, %143, %cst_79 {dimension_numbers = #tpu.dot_dimension_numbers<[1], [0], [0], [1], [0, 0, 1, 1], [], []>} : vector<32x128xbf16>, vector<128x16xbf16>, vector<32x16xf32> -> vector<32x16xf32>
    %c3_80 = arith.constant 3 : index
    %c0_81 = arith.constant 0 : index
    %c0_82 = arith.constant 0 : index
    %145 = vector.load %arg5[%c3_80, %c0_81, %c0_82] : memref<6x1x16xf32, #tpu.memory_space<vmem>>, vector<1x1x16xf32>
    %146 = vector.shape_cast %145 : vector<1x1x16xf32> to vector<1x16xf32>
    %147 = vector.broadcast %146 : vector<1x16xf32> to vector<32x16xf32>
    %148 = arith.addf %144, %147 : vector<32x16xf32>
    %149 = arith.truncf %141 : vector<32x16xf32> to vector<32x16xbf16>
    %150 = vector.shape_cast %149 : vector<32x16xbf16> to vector<4x8x16xbf16>
    %151 = arith.truncf %148 : vector<32x16xf32> to vector<32x16xbf16>
    %152 = vector.shape_cast %151 : vector<32x16xbf16> to vector<4x8x16xbf16>
    "tpu.trace_start"() <{level = 10 : i32, message = "btd,bsd->bts"}> : () -> ()
    %cst_83 = arith.constant dense<0.000000e+00> : vector<4x8x8xf32>
    %153 = tpu.matmul %150, %150, %cst_83 {dimension_numbers = #tpu.dot_dimension_numbers<[2], [2], [1], [1], [0, 0, 0, 1, 1, 1], [0], [0]>} : vector<4x8x16xbf16>, vector<4x8x16xbf16>, vector<4x8x8xf32> -> vector<4x8x8xf32>
    "tpu.trace_stop"() : () -> ()
    %cst_84 = arith.constant 0.102062076 : f32
    %154 = vector.broadcast %cst_84 : f32 to vector<4x8x8xf32>
    %155 = arith.mulf %153, %154 : vector<4x8x8xf32>
    %156 = vector.shape_cast %7 : vector<8x8xf32> to vector<1x8x8xf32>
    %157 = vector.broadcast %156 : vector<1x8x8xf32> to vector<4x8x8xf32>
    %158 = arith.addf %155, %157 : vector<4x8x8xf32>
    %cst_85 = arith.constant dense<0xFF800000> : vector<4x8xf32>
    %159 = vector.multi_reduction <maximumf>, %158, %cst_85 [2] : vector<4x8x8xf32> to vector<4x8xf32>
    %160 = vector.shape_cast %159 : vector<4x8xf32> to vector<4x8x1xf32>
    %161 = vector.broadcast %160 : vector<4x8x1xf32> to vector<4x8x8xf32>
    %162 = arith.subf %158, %161 : vector<4x8x8xf32>
    %163 = math.exp %162 : vector<4x8x8xf32>
    %cst_86 = arith.constant dense<0.000000e+00> : vector<4x8xf32>
    %164 = vector.multi_reduction <add>, %163, %cst_86 [2] : vector<4x8x8xf32> to vector<4x8xf32>
    %165 = vector.shape_cast %164 : vector<4x8xf32> to vector<4x8x1xf32>
    %166 = tpu.reciprocal %165 {approx = true} : vector<4x8x1xf32> -> vector<4x8x1xf32>
    %167 = vector.broadcast %166 : vector<4x8x1xf32> to vector<4x8x8xf32>
    %168 = arith.mulf %163, %167 : vector<4x8x8xf32>
    %169 = arith.truncf %168 : vector<4x8x8xf32> to vector<4x8x8xbf16>
    "tpu.trace_start"() <{level = 10 : i32, message = "bts,bsd->btd"}> : () -> ()
    %cst_87 = arith.constant dense<0.000000e+00> : vector<4x8x16xf32>
    %170 = tpu.matmul %169, %152, %cst_87 {dimension_numbers = #tpu.dot_dimension_numbers<[2], [1], [1], [2], [0, 0, 0, 1, 1, 2], [0], [0]>} : vector<4x8x8xbf16>, vector<4x8x16xbf16>, vector<4x8x16xf32> -> vector<4x8x16xf32>
    "tpu.trace_stop"() : () -> ()
    %171 = vector.shape_cast %170 : vector<4x8x16xf32> to vector<32x16xf32>
    %172 = arith.truncf %171 : vector<32x16xf32> to vector<32x16xbf16>
    %c3_88 = arith.constant 3 : index
    %c0_89 = arith.constant 0 : index
    %c0_90 = arith.constant 0 : index
    %173 = vector.load %arg6[%c3_88, %c0_89, %c0_90] : memref<6x16x128xbf16, #tpu.memory_space<vmem>>, vector<1x16x128xbf16>
    %174 = vector.shape_cast %173 : vector<1x16x128xbf16> to vector<16x128xbf16>
    %cst_91 = arith.constant dense<0.000000e+00> : vector<32x128xf32>
    %175 = tpu.matmul %172, %174, %cst_91 {dimension_numbers = #tpu.dot_dimension_numbers<[1], [0], [0], [1], [0, 0, 1, 1], [], []>} : vector<32x16xbf16>, vector<16x128xbf16>, vector<32x128xf32> -> vector<32x128xf32>
    %176 = arith.addf %134, %175 : vector<32x128xf32>
    %c4 = arith.constant 4 : index
    %c0_92 = arith.constant 0 : index
    %c0_93 = arith.constant 0 : index
    %177 = vector.load %arg2[%c4, %c0_92, %c0_93] : memref<6x128x16xbf16, #tpu.memory_space<vmem>>, vector<1x128x16xbf16>
    %178 = vector.shape_cast %177 : vector<1x128x16xbf16> to vector<128x16xbf16>
    %cst_94 = arith.constant dense<0.000000e+00> : vector<32x16xf32>
    %179 = tpu.matmul %1, %178, %cst_94 {dimension_numbers = #tpu.dot_dimension_numbers<[1], [0], [0], [1], [0, 0, 1, 1], [], []>} : vector<32x128xbf16>, vector<128x16xbf16>, vector<32x16xf32> -> vector<32x16xf32>
    %c4_95 = arith.constant 4 : index
    %c0_96 = arith.constant 0 : index
    %c0_97 = arith.constant 0 : index
    %180 = vector.load %arg3[%c4_95, %c0_96, %c0_97] : memref<6x1x16xf32, #tpu.memory_space<vmem>>, vector<1x1x16xf32>
    %181 = vector.shape_cast %180 : vector<1x1x16xf32> to vector<1x16xf32>
    %182 = vector.broadcast %181 : vector<1x16xf32> to vector<32x16xf32>
    %183 = arith.addf %179, %182 : vector<32x16xf32>
    %c4_98 = arith.constant 4 : index
    %c0_99 = arith.constant 0 : index
    %c0_100 = arith.constant 0 : index
    %184 = vector.load %arg4[%c4_98, %c0_99, %c0_100] : memref<6x128x16xbf16, #tpu.memory_space<vmem>>, vector<1x128x16xbf16>
    %185 = vector.shape_cast %184 : vector<1x128x16xbf16> to vector<128x16xbf16>
    %cst_101 = arith.constant dense<0.000000e+00> : vector<32x16xf32>
    %186 = tpu.matmul %1, %185, %cst_101 {dimension_numbers = #tpu.dot_dimension_numbers<[1], [0], [0], [1], [0, 0, 1, 1], [], []>} : vector<32x128xbf16>, vector<128x16xbf16>, vector<32x16xf32> -> vector<32x16xf32>
    %c4_102 = arith.constant 4 : index
    %c0_103 = arith.constant 0 : index
    %c0_104 = arith.constant 0 : index
    %187 = vector.load %arg5[%c4_102, %c0_103, %c0_104] : memref<6x1x16xf32, #tpu.memory_space<vmem>>, vector<1x1x16xf32>
    %188 = vector.shape_cast %187 : vector<1x1x16xf32> to vector<1x16xf32>
    %189 = vector.broadcast %188 : vector<1x16xf32> to vector<32x16xf32>
    %190 = arith.addf %186, %189 : vector<32x16xf32>
    %191 = arith.truncf %183 : vector<32x16xf32> to vector<32x16xbf16>
    %192 = vector.shape_cast %191 : vector<32x16xbf16> to vector<4x8x16xbf16>
    %193 = arith.truncf %190 : vector<32x16xf32> to vector<32x16xbf16>
    %194 = vector.shape_cast %193 : vector<32x16xbf16> to vector<4x8x16xbf16>
    "tpu.trace_start"() <{level = 10 : i32, message = "btd,bsd->bts"}> : () -> ()
    %cst_105 = arith.constant dense<0.000000e+00> : vector<4x8x8xf32>
    %195 = tpu.matmul %192, %192, %cst_105 {dimension_numbers = #tpu.dot_dimension_numbers<[2], [2], [1], [1], [0, 0, 0, 1, 1, 1], [0], [0]>} : vector<4x8x16xbf16>, vector<4x8x16xbf16>, vector<4x8x8xf32> -> vector<4x8x8xf32>
    "tpu.trace_stop"() : () -> ()
    %cst_106 = arith.constant 0.102062076 : f32
    %196 = vector.broadcast %cst_106 : f32 to vector<4x8x8xf32>
    %197 = arith.mulf %195, %196 : vector<4x8x8xf32>
    %198 = vector.shape_cast %7 : vector<8x8xf32> to vector<1x8x8xf32>
    %199 = vector.broadcast %198 : vector<1x8x8xf32> to vector<4x8x8xf32>
    %200 = arith.addf %197, %199 : vector<4x8x8xf32>
    %cst_107 = arith.constant dense<0xFF800000> : vector<4x8xf32>
    %201 = vector.multi_reduction <maximumf>, %200, %cst_107 [2] : vector<4x8x8xf32> to vector<4x8xf32>
    %202 = vector.shape_cast %201 : vector<4x8xf32> to vector<4x8x1xf32>
    %203 = vector.broadcast %202 : vector<4x8x1xf32> to vector<4x8x8xf32>
    %204 = arith.subf %200, %203 : vector<4x8x8xf32>
    %205 = math.exp %204 : vector<4x8x8xf32>
    %cst_108 = arith.constant dense<0.000000e+00> : vector<4x8xf32>
    %206 = vector.multi_reduction <add>, %205, %cst_108 [2] : vector<4x8x8xf32> to vector<4x8xf32>
    %207 = vector.shape_cast %206 : vector<4x8xf32> to vector<4x8x1xf32>
    %208 = tpu.reciprocal %207 {approx = true} : vector<4x8x1xf32> -> vector<4x8x1xf32>
    %209 = vector.broadcast %208 : vector<4x8x1xf32> to vector<4x8x8xf32>
    %210 = arith.mulf %205, %209 : vector<4x8x8xf32>
    %211 = arith.truncf %210 : vector<4x8x8xf32> to vector<4x8x8xbf16>
    "tpu.trace_start"() <{level = 10 : i32, message = "bts,bsd->btd"}> : () -> ()
    %cst_109 = arith.constant dense<0.000000e+00> : vector<4x8x16xf32>
    %212 = tpu.matmul %211, %194, %cst_109 {dimension_numbers = #tpu.dot_dimension_numbers<[2], [1], [1], [2], [0, 0, 0, 1, 1, 2], [0], [0]>} : vector<4x8x8xbf16>, vector<4x8x16xbf16>, vector<4x8x16xf32> -> vector<4x8x16xf32>
    "tpu.trace_stop"() : () -> ()
    %213 = vector.shape_cast %212 : vector<4x8x16xf32> to vector<32x16xf32>
    %214 = arith.truncf %213 : vector<32x16xf32> to vector<32x16xbf16>
    %c4_110 = arith.constant 4 : index
    %c0_111 = arith.constant 0 : index
    %c0_112 = arith.constant 0 : index
    %215 = vector.load %arg6[%c4_110, %c0_111, %c0_112] : memref<6x16x128xbf16, #tpu.memory_space<vmem>>, vector<1x16x128xbf16>
    %216 = vector.shape_cast %215 : vector<1x16x128xbf16> to vector<16x128xbf16>
    %cst_113 = arith.constant dense<0.000000e+00> : vector<32x128xf32>
    %217 = tpu.matmul %214, %216, %cst_113 {dimension_numbers = #tpu.dot_dimension_numbers<[1], [0], [0], [1], [0, 0, 1, 1], [], []>} : vector<32x16xbf16>, vector<16x128xbf16>, vector<32x128xf32> -> vector<32x128xf32>
    %218 = arith.addf %176, %217 : vector<32x128xf32>
    %c5 = arith.constant 5 : index
    %c0_114 = arith.constant 0 : index
    %c0_115 = arith.constant 0 : index
    %219 = vector.load %arg2[%c5, %c0_114, %c0_115] : memref<6x128x16xbf16, #tpu.memory_space<vmem>>, vector<1x128x16xbf16>
    %220 = vector.shape_cast %219 : vector<1x128x16xbf16> to vector<128x16xbf16>
    %cst_116 = arith.constant dense<0.000000e+00> : vector<32x16xf32>
    %221 = tpu.matmul %1, %220, %cst_116 {dimension_numbers = #tpu.dot_dimension_numbers<[1], [0], [0], [1], [0, 0, 1, 1], [], []>} : vector<32x128xbf16>, vector<128x16xbf16>, vector<32x16xf32> -> vector<32x16xf32>
    %c5_117 = arith.constant 5 : index
    %c0_118 = arith.constant 0 : index
    %c0_119 = arith.constant 0 : index
    %222 = vector.load %arg3[%c5_117, %c0_118, %c0_119] : memref<6x1x16xf32, #tpu.memory_space<vmem>>, vector<1x1x16xf32>
    %223 = vector.shape_cast %222 : vector<1x1x16xf32> to vector<1x16xf32>
    %224 = vector.broadcast %223 : vector<1x16xf32> to vector<32x16xf32>
    %225 = arith.addf %221, %224 : vector<32x16xf32>
    %c5_120 = arith.constant 5 : index
    %c0_121 = arith.constant 0 : index
    %c0_122 = arith.constant 0 : index
    %226 = vector.load %arg4[%c5_120, %c0_121, %c0_122] : memref<6x128x16xbf16, #tpu.memory_space<vmem>>, vector<1x128x16xbf16>
    %227 = vector.shape_cast %226 : vector<1x128x16xbf16> to vector<128x16xbf16>
    %cst_123 = arith.constant dense<0.000000e+00> : vector<32x16xf32>
    %228 = tpu.matmul %1, %227, %cst_123 {dimension_numbers = #tpu.dot_dimension_numbers<[1], [0], [0], [1], [0, 0, 1, 1], [], []>} : vector<32x128xbf16>, vector<128x16xbf16>, vector<32x16xf32> -> vector<32x16xf32>
    %c5_124 = arith.constant 5 : index
    %c0_125 = arith.constant 0 : index
    %c0_126 = arith.constant 0 : index
    %229 = vector.load %arg5[%c5_124, %c0_125, %c0_126] : memref<6x1x16xf32, #tpu.memory_space<vmem>>, vector<1x1x16xf32>
    %230 = vector.shape_cast %229 : vector<1x1x16xf32> to vector<1x16xf32>
    %231 = vector.broadcast %230 : vector<1x16xf32> to vector<32x16xf32>
    %232 = arith.addf %228, %231 : vector<32x16xf32>
    %233 = arith.truncf %225 : vector<32x16xf32> to vector<32x16xbf16>
    %234 = vector.shape_cast %233 : vector<32x16xbf16> to vector<4x8x16xbf16>
    %235 = arith.truncf %232 : vector<32x16xf32> to vector<32x16xbf16>
    %236 = vector.shape_cast %235 : vector<32x16xbf16> to vector<4x8x16xbf16>
    "tpu.trace_start"() <{level = 10 : i32, message = "btd,bsd->bts"}> : () -> ()
    %cst_127 = arith.constant dense<0.000000e+00> : vector<4x8x8xf32>
    %237 = tpu.matmul %234, %234, %cst_127 {dimension_numbers = #tpu.dot_dimension_numbers<[2], [2], [1], [1], [0, 0, 0, 1, 1, 1], [0], [0]>} : vector<4x8x16xbf16>, vector<4x8x16xbf16>, vector<4x8x8xf32> -> vector<4x8x8xf32>
    "tpu.trace_stop"() : () -> ()
    %cst_128 = arith.constant 0.102062076 : f32
    %238 = vector.broadcast %cst_128 : f32 to vector<4x8x8xf32>
    %239 = arith.mulf %237, %238 : vector<4x8x8xf32>
    %240 = vector.shape_cast %7 : vector<8x8xf32> to vector<1x8x8xf32>
    %241 = vector.broadcast %240 : vector<1x8x8xf32> to vector<4x8x8xf32>
    %242 = arith.addf %239, %241 : vector<4x8x8xf32>
    %cst_129 = arith.constant dense<0xFF800000> : vector<4x8xf32>
    %243 = vector.multi_reduction <maximumf>, %242, %cst_129 [2] : vector<4x8x8xf32> to vector<4x8xf32>
    %244 = vector.shape_cast %243 : vector<4x8xf32> to vector<4x8x1xf32>
    %245 = vector.broadcast %244 : vector<4x8x1xf32> to vector<4x8x8xf32>
    %246 = arith.subf %242, %245 : vector<4x8x8xf32>
    %247 = math.exp %246 : vector<4x8x8xf32>
    %cst_130 = arith.constant dense<0.000000e+00> : vector<4x8xf32>
    %248 = vector.multi_reduction <add>, %247, %cst_130 [2] : vector<4x8x8xf32> to vector<4x8xf32>
    %249 = vector.shape_cast %248 : vector<4x8xf32> to vector<4x8x1xf32>
    %250 = tpu.reciprocal %249 {approx = true} : vector<4x8x1xf32> -> vector<4x8x1xf32>
    %251 = vector.broadcast %250 : vector<4x8x1xf32> to vector<4x8x8xf32>
    %252 = arith.mulf %247, %251 : vector<4x8x8xf32>
    %253 = arith.truncf %252 : vector<4x8x8xf32> to vector<4x8x8xbf16>
    "tpu.trace_start"() <{level = 10 : i32, message = "bts,bsd->btd"}> : () -> ()
    %cst_131 = arith.constant dense<0.000000e+00> : vector<4x8x16xf32>
    %254 = tpu.matmul %253, %236, %cst_131 {dimension_numbers = #tpu.dot_dimension_numbers<[2], [1], [1], [2], [0, 0, 0, 1, 1, 2], [0], [0]>} : vector<4x8x8xbf16>, vector<4x8x16xbf16>, vector<4x8x16xf32> -> vector<4x8x16xf32>
    "tpu.trace_stop"() : () -> ()
    %255 = vector.shape_cast %254 : vector<4x8x16xf32> to vector<32x16xf32>
    %256 = arith.truncf %255 : vector<32x16xf32> to vector<32x16xbf16>
    %c5_132 = arith.constant 5 : index
    %c0_133 = arith.constant 0 : index
    %c0_134 = arith.constant 0 : index
    %257 = vector.load %arg6[%c5_132, %c0_133, %c0_134] : memref<6x16x128xbf16, #tpu.memory_space<vmem>>, vector<1x16x128xbf16>
    %258 = vector.shape_cast %257 : vector<1x16x128xbf16> to vector<16x128xbf16>
    %cst_135 = arith.constant dense<0.000000e+00> : vector<32x128xf32>
    %259 = tpu.matmul %256, %258, %cst_135 {dimension_numbers = #tpu.dot_dimension_numbers<[1], [0], [0], [1], [0, 0, 1, 1], [], []>} : vector<32x16xbf16>, vector<16x128xbf16>, vector<32x128xf32> -> vector<32x128xf32>
    %260 = arith.addf %218, %259 : vector<32x128xf32>
    %c0_136 = arith.constant 0 : index
    %c0_137 = arith.constant 0 : index
    %261 = vector.load %arg7[%c0_136, %c0_137] : memref<1x128xf32, #tpu.memory_space<vmem>>, vector<1x128xf32>
    %262 = vector.broadcast %261 : vector<1x128xf32> to vector<32x128xf32>
    %263 = arith.addf %260, %262 : vector<32x128xf32>
    %c0_138 = arith.constant 0 : index
    %c0_139 = arith.constant 0 : index
    %264 = vector.load %arg8[%c0_138, %c0_139] : memref<32x128xf32, #tpu.memory_space<vmem>>, vector<32x128xf32>
    tpu.vector_store %arg8[%c0_138, %c0_139], %263 {strides = array<i32>} : memref<32x128xf32, #tpu.memory_space<vmem>>, vector<32x128xf32>,
    return
  }
  func.func @transform_0(%arg0: i32) -> (i32, i32) {
    %c0_i32 = arith.constant 0 : i32
    %c0_i32_0 = arith.constant 0 : i32
    return %arg0, %c0_i32 : i32, i32
  }
  func.func @transform_1(%arg0: i32) -> (i32, i32, i32) {
    %c0_i32 = arith.constant 0 : i32
    %c0_i32_0 = arith.constant 0 : i32
    %c0_i32_1 = arith.constant 0 : i32
    %c0_i32_2 = arith.constant 0 : i32
    return %c0_i32, %c0_i32_0, %c0_i32_1 : i32, i32, i32
  }
  func.func @transform_2(%arg0: i32) -> (i32, i32, i32) {
    %c0_i32 = arith.constant 0 : i32
    %c0_i32_0 = arith.constant 0 : i32
    %c0_i32_1 = arith.constant 0 : i32
    %c0_i32_2 = arith.constant 0 : i32
    return %c0_i32, %c0_i32_0, %c0_i32_1 : i32, i32, i32
  }
  func.func @transform_3(%arg0: i32) -> (i32, i32, i32) {
    %c0_i32 = arith.constant 0 : i32
    %c0_i32_0 = arith.constant 0 : i32
    %c0_i32_1 = arith.constant 0 : i32
    %c0_i32_2 = arith.constant 0 : i32
    return %c0_i32, %c0_i32_0, %c0_i32_1 : i32, i32, i32
  }
  func.func @transform_4(%arg0: i32) -> (i32, i32, i32) {
    %c0_i32 = arith.constant 0 : i32
    %c0_i32_0 = arith.constant 0 : i32
    %c0_i32_1 = arith.constant 0 : i32
    %c0_i32_2 = arith.constant 0 : i32
    return %c0_i32, %c0_i32_0, %c0_i32_1 : i32, i32, i32
  }
  func.func @transform_5(%arg0: i32) -> (i32, i32, i32) {
    %c0_i32 = arith.constant 0 : i32
    %c0_i32_0 = arith.constant 0 : i32
    %c0_i32_1 = arith.constant 0 : i32
    %c0_i32_2 = arith.constant 0 : i32
    return %c0_i32, %c0_i32_0, %c0_i32_1 : i32, i32, i32
  }
  func.func @transform_6(%arg0: i32) -> (i32, i32) {
    %c0_i32 = arith.constant 0 : i32
    %c0_i32_0 = arith.constant 0 : i32
    %c0_i32_1 = arith.constant 0 : i32
    return %c0_i32, %c0_i32_0 : i32, i32
  }
  func.func @transform_7(%arg0: i32) -> (i32, i32) {
    %c0_i32 = arith.constant 0 : i32
    %c0_i32_0 = arith.constant 0 : i32
    return %arg0, %c0_i32 : i32, i32
  }
}

</mosaic_0001>

<bundles_post_ra>
// kernel: tpu_custom_call.1
= control target key start
LH: loop header
LB: loop body
LE: loop exit
PB: predicated region body
PF: predicated region fallthrough
CT: control target
= control target key end

     0   :  { %s6919_s0 = inlined_call_operand.vmem [shape: f32[32,128], index: 0, kind: input, shape index: {}]   ;;  %s6920_s1 = inlined_call_operand.vmem [shape: bf16[6,128,16], index: 1, kind: input, shape index: {}]   ;;  %s6921_s2 = inlined_call_operand.vmem [shape: f32[6,1,16], index: 2, kind: input, shape index: {}]   ;;  %s6922_s3 = inlined_call_operand.vmem [shape: bf16[6,128,16], index: 3, kind: input, shape index: {}]   ;;  %s6923_s4 = inlined_call_operand.vmem [shape: f32[6,1,16], index: 4, kind: input, shape index: {}]   ;;  %s6924_s5 = inlined_call_operand.vmem [shape: bf16[6,16,128], index: 5, kind: input, shape index: {}]   ;;  %s6925_s6 = inlined_call_operand.vmem [shape: f32[1,128], index: 6, kind: input, shape index: {}]   ;;  %s6926_s7 = inlined_call_operand.hbm [shape: f32[32,128], index: 7, kind: output, shape index: {}]  }
   0x1   :  { %v5816_v0 = vld [vmem:[%s6920_s1 + $0x38] sm:$0xff]   ;;  %v5817_v1 = vld [vmem:[%s6920_s1 + $0x30] sm:$0xff]   ;;  %v5818_v2 = vld [vmem:[%s6920_s1 + $0x28] sm:$0xff]  }
   0x2   :  { %5246 = vmatprep.subr.bf16.mxu0 %v5816_v0  ;;  %v5819_v3 = vld [vmem:[%s6920_s1 + $0x20] sm:$0xff]   ;;  %v29_v5 = vld [vmem:[%s6919_s0 + $0x8] sm:$0xff]  ;;  %v5824_v7 = vld [vmem:[%s6922_s3 + $0x38] sm:$0xff]  }
   0x3   :  { %5247 = vmatpush3.bf16.msra.mxu0 %v5816_v0  ;;  %v28_v4 = vld [vmem:[%s6919_s0] sm:$0xff]  ;;  %v5825_v8 = vld [vmem:[%s6922_s3 + $0x30] sm:$0xff]   ;;  %v5820_v9 = vld [vmem:[%s6920_s1 + $0x18] sm:$0xff]   ;;  %5266 = vmatprep.subr.bf16.mxu1 %v5824_v7 }
   0x4   :  { %5248 = vmatprep.subr.bf16.mxu0 %v5817_v1  ;;  %v6100_v6 = vpack.c.bf16 %v29_v5, %v28_v4  ;;  %5267 = vmatpush3.bf16.msra.mxu1 %v5824_v7  ;;  %v5826_v10 = vld [vmem:[%s6922_s3 + $0x28] sm:$0xff]   ;;  %v5821_v11 = vld [vmem:[%s6920_s1 + $0x10] sm:$0xff]   ;;  %v5827_v12 = vld [vmem:[%s6922_s3 + $0x20] sm:$0xff]  }
   0x5   :  { %5268 = vmatprep.subr.bf16.mxu1 %v5825_v8  ;;  %v5822_v13 = vld [vmem:[%s6920_s1 + $0x8] sm:$0xff]   ;;  %v5828_v14 = vld [vmem:[%s6922_s3 + $0x18] sm:$0xff]   ;;  %v5823_v15 = vld [vmem:[%s6920_s1] sm:$0xff]  }
   0x6   :  { %5262 = vmatprep.mubr.bf16.mxu0 %v6100_v6  ;;  %5282 = vmatprep.mubr.bf16.mxu1 %v6100_v6  ;;  %v5829_v16 = vld [vmem:[%s6922_s3 + $0x10] sm:$0xff]   ;;  %v31_v18 = vld [vmem:[%s6919_s0 + $0x18] sm:$0xff] }
   0x7   :  { %5249 = vmatpush3.bf16.msra.mxu0 %v5817_v1  ;;  %v30_v17 = vld [vmem:[%s6919_s0 + $0x10] sm:$0xff] }
   0x8   :  { %5250 = vmatprep.subr.bf16.mxu0 %v5818_v2  ;;  %5269 = vmatpush3.bf16.msra.mxu1 %v5825_v8  ;;  %v6140_v19 = vpack.c.bf16 %v31_v18, %v30_v17 }
   0x9   :  { %5270 = vmatprep.subr.bf16.mxu1 %v5826_v10 }
   0xb   :  { %5251 = vmatpush3.bf16.msra.mxu0 %v5818_v2 }
   0xc   :  { %5252 = vmatprep.subr.bf16.mxu0 %v5819_v3  ;;  %5271 = vmatpush3.bf16.msra.mxu1 %v5826_v10 }
   0xd   :  { %5272 = vmatprep.subr.bf16.mxu1 %v5827_v12 }
   0xf   :  { %5253 = vmatpush3.bf16.msra.mxu0 %v5819_v3 }
  0x10   :  { %5254 = vmatprep.subr.bf16.mxu0 %v5820_v9  ;;  %5273 = vmatpush3.bf16.msra.mxu1 %v5827_v12 }
  0x11   :  { %5274 = vmatprep.subr.bf16.mxu1 %v5828_v14 }
  0x13   :  { %5255 = vmatpush3.bf16.msra.mxu0 %v5820_v9 }
  0x14   :  { %5256 = vmatprep.subr.bf16.mxu0 %v5821_v11  ;;  %5275 = vmatpush3.bf16.msra.mxu1 %v5828_v14 }
  0x15   :  { %5276 = vmatprep.subr.bf16.mxu1 %v5829_v16 }
  0x17   :  { %5257 = vmatpush3.bf16.msra.mxu0 %v5821_v11 }
  0x18   :  { %5258 = vmatprep.subr.bf16.mxu0 %v5822_v13  ;;  %5277 = vmatpush3.bf16.msra.mxu1 %v5829_v16 }
  0x1b   :  { %5259 = vmatpush3.bf16.msra.mxu0 %v5822_v13 }
  0x1c   :  { %5260 = vmatprep.subr.bf16.mxu0 %v5823_v15 }
  0x1f   :  { %5261 = vmatpush3.bf16.msra.mxu0 %v5823_v15 }
  0x22   :  { %5263 = vmatmul.mubr.bf16.vlgmr.msra.gmra.mxu0 %v6140_v19 }
  0x23   :  { %12 = vsyncpa [#allocation3], 0  ;;  %v5830_v20 = vld [vmem:[%s6922_s3 + $0x8] sm:$0xff]   ;;  %v5831_v21 = vld [vmem:[%s6922_s3] sm:$0xff]   ;;  %v6036_v22 = vmov 0.0   ;;  %vm6037_vm0 = vmmov 0   ;;  %v34_v49 = vlaneseq }
  0x24   :  { %5278 = vmatprep.subr.bf16.mxu1 %v5830_v20  ;;  %5286 = vmatprep.subr.bf16.mxu0 %v6036_v22  ;;  %v4561_v24 = vld [vmem:[%s6921_s2] ss:$0 sm:$0xff]  ;;  %vm304_vm1 = vcmask 130048   ;;  %vm537_vm2 = vcmask 1043456   ;;  %v6038_v54 = vmov -1e+30  }
  0x25   :  { %5279 = vmatpush3.bf16.msra.mxu1 %v5830_v20  ;;  %5288 = vmatprep.mubr.msk.bf16.mxu0 %vm6037_vm0, %v6036_v22  ;;  %v4570_v40 = vld [vmem:[%s6923_s4] ss:$0 sm:$0xff]  ;;  %v35_v50 = vshrl.u32 %v34_v49, 7  ;;  %v37_v51 = vand.u32 127, %v34_v49  ;;  %vm485_vm4 = vcmask 64512   ;;  %s6039_s18 = smov [#allocation2]  }
  0x26   :  { %5280 = vmatprep.subr.bf16.mxu1 %v5831_v21  ;;  %s4550_s19 = sshll.u32 %s6039_s18, 4  ;;  %s4551_s19 = int_to_ptr.vmem [resolvable:$true] %s4550_s19 }
  0x27   :  { %vm38_vm3 = vcmp.ge.s32.totalorder %v35_v50, %v37_v51  ;;  %p6019_p1 = scmp.lt.s32.totalorder %s4551_s19, %s4551_s19 }
  0x28   :  { %v6188_v55 = vsel %vm38_vm3, 0.0, %v6038_v54 }
  0x29   :  { %5281 = vmatpush3.bf16.msra.mxu1 %v5831_v21 }
  0x2a   :  { %5292 = vmatprep.subr.bf16.mxu1 %v6036_v22 }
  0x2c   :  { %5283 = vmatmul.mubr.bf16.vlgmr.msra.gmra.mxu1 %v6140_v19 }
  0x2d   :  { %5294 = vmatprep.mubr.msk.bf16.mxu1 %vm6037_vm0, %v6036_v22 }
  0xe2   :  { %v5264_v23 = vpop.f32.mrf.mxu0 }
  0xe3   :  { %v154_v30 = vadd.f32 %v5264_v23, %v4561_v24 }
  0xe4   :  { %v145_v25 = vpop.f32.mrf.mxu0 }
  0xe5   :  { %v146_v26 = vadd.f32 %v4561_v24, %v145_v25  ;;  %v4966_v34 = vpack.c.bf16 %v154_v30, %v154_v30 }
  0xe6   :  { %v5265_v27 = vpop.f32.mrf.mxu0 }
  0xe7   :  { %v4964_v28 = vpack.c.bf16 %v146_v26, %v146_v26  ;;  %v157_v35 = vadd.f32 %v5265_v27, %v4561_v24  ;;  %v392_v37 = vsel %vm304_vm1, %v4966_v34, 0 }
  0xe8   :  { %v148_v29 = vpop.f32.mrf.mxu0 }
  0xe9   :  { %v306_v31 = vsel %vm304_vm1, %v4964_v28, 0  ;;  %v149_v32 = vadd.f32 %v4561_v24, %v148_v29  ;;  %v4967_v38 = vpack.c.bf16 %v157_v35, %v157_v35 }
  0xea   :  { %5287 = vmatpush3.bf16.xpose.msra.mxu0 %v306_v31 }
  0xeb   :  { %v4965_v33 = vpack.c.bf16 %v149_v32, %v149_v32  ;;  %5298 = vmatprep.subr.bf16.mxu0 %v6036_v22  ;;  %v435_v39 = vsel %vm304_vm1, %v4967_v38, 0 }
  0xec   :  { %v5284_v41 = vpop.f32.mrf.mxu1 }
  0xed   :  { %v349_v36 = vsel %vm304_vm1, %v4965_v33, 0  ;;  %v6182_v42 = vadd.f32 %v5284_v41, %v4570_v40 }
  0xee   :  { %5293 = vmatpush3.bf16.xpose.msra.mxu1 %v349_v36  ;;  %v265_v43 = vpop.f32.mrf.mxu1 }
  0xef   :  { %5304 = vmatprep.subr.bf16.mxu1 %v6036_v22  ;;  %v266_v44 = vadd.f32 %v4570_v40, %v265_v43 }
  0xf0   :  { %v5285_v45 = vpop.f32.mrf.mxu1 }
  0xf1   :  { %5289 = vmatmul.mubr.msk.bf16.vlgmr.msra.gmra.mxu0 %vm304_vm1, %v4964_v28  ;;  %v4968_v46 = vpack.c.bf16 %v266_v44, %v266_v44  ;;  %v6184_v47 = vadd.f32 %v5285_v45, %v4570_v40 }
  0xf2   :  { %5299 = vmatpush3.bf16.xpose.msra.mxu0 %v392_v37  ;;  %5300 = vmatprep.mubr.msk.bf16.mxu0 %vm6037_vm0, %v6036_v22  ;;  %v268_v53 = vpop.f32.mrf.mxu1 }
  0xf3   :  { %5310 = vmatprep.subr.bf16.mxu0 %v6036_v22  ;;  %v539_v48 = vsel %vm537_vm2, %v4968_v46, 0  ;;  %v269_v17 = vadd.f32 %v4570_v40, %v268_v53 }
  0xf5   :  { %5295 = vmatmul.mubr.msk.bf16.vlgmr.msra.gmra.mxu1 %vm304_vm1, %v4965_v33  ;;  %v4969_v18 = vpack.c.bf16 %v269_v17, %v269_v17  ;;  %v5846_v17 = vld [vmem:[%s6922_s3 + $0x48] sm:$0xff]  }
  0xf6   :  { %5305 = vmatpush3.bf16.xpose.msra.mxu1 %v435_v39  ;;  %5306 = vmatprep.mubr.msk.bf16.mxu1 %vm6037_vm0, %v6036_v22 }
  0xf7   :  { %5316 = vmatprep.subr.bf16.mxu1 %v6036_v22  ;;  %v585_v20 = vsel %vm537_vm2, %v4969_v18, 0 }
  0xf9   :  { %5301 = vmatmul.mubr.msk.bf16.vlgmr.msra.gmra.mxu0 %vm304_vm1, %v4966_v34 }
  0xfa   :  { %5312 = vmatprep.mubr.msk.bf16.mxu0 %vm6037_vm0, %v6036_v22  ;;  %5311 = vmatpush3.bf16.msra.mxu0 %v539_v48  ;;  %v4970_v48 = vpack.c.bf16 %v6182_v42, %v6182_v42 }
  0xfb   :  { %5322 = vmatprep.subr.bf16.mxu0 %v6036_v22 }
  0xfc   :  { %v631_v53 = vsel %vm537_vm2, %v4970_v48, 0 }
  0xfd   :  { %5307 = vmatmul.mubr.msk.bf16.vlgmr.msra.gmra.mxu1 %vm304_vm1, %v4967_v38 }
  0xfe   :  { %5318 = vmatprep.mubr.msk.bf16.mxu1 %vm6037_vm0, %v6036_v22  ;;  %5317 = vmatpush3.bf16.msra.mxu1 %v585_v20  ;;  %v5847_v20 = vld [vmem:[%s6922_s3 + $0x40] sm:$0xff]  }
  0xff   :  { %5328 = vmatprep.subr.bf16.mxu1 %v6036_v22 }
 0x1b1   :  { %v342_v52 = vpop.f32.mrf.mxu0 }
 0x1b2   :  { %v477_v56 = vmul.f32 0.10206208, %v342_v52  ;;  %v5832_v52 = vld [vmem:[%s6920_s1 + $0x78] sm:$0xff]  }
 0x1b3   :  { %v5290_v57 = vpop.f32.mrf.mxu0 }
 0x1b4   :  { %v481_v58 = vadd.f32 %v477_v56, %v6188_v55  ;;  %v5833_v57 = vld [vmem:[%s6920_s1 + $0x70] sm:$0xff]  }
 0x1b5   :  { %v345_v59 = vpop.f32.mrf.mxu0  ;;  %v385_v60 = vpop.f32.mrf.mxu1 }
 0x1b6   :  { %v486_v61 = vsel %vm485_vm4, %v481_v58, -inf  ;;  %v478_v2 = vmul.f32 0.10206208, %v385_v60  ;;  %v4971_v59 = vpack.c.bf16 %v6184_v47, %v6184_v47  ;;  %v5835_v47 = vld [vmem:[%s6920_s1 + $0x60] sm:$0xff]  }
 0x1b7   :  { %v5296_v62 = vpop.f32.mrf.mxu1  ;;  %487 = vmax.xlane.f32.xlu0 %v486_v61  ;;  %v5291_v63 = vpop.f32.mrf.mxu0 }
 0x1b8   :  { %v482_v11 = vadd.f32 %v478_v2, %v6188_v55  ;;  %v5834_v62 = vld [vmem:[%s6920_s1 + $0x68] sm:$0xff]   ;;  %v5836_v2 = vld [vmem:[%s6920_s1 + $0x58] sm:$0xff]  }
 0x1b9   :  { %v388_v0 = vpop.f32.mrf.mxu1  ;;  %v428_v1 = vpop.f32.mrf.mxu0 }
 0x1ba   :  { %v479_v3 = vmul.f32 0.10206208, %v428_v1  ;;  %v489_v15 = vsel %vm485_vm4, %v482_v11, -inf  ;;  %v677_v0 = vsel %vm537_vm2, %v4971_v59, 0 }
 0x1bb   :  { %v5297_v4 = vpop.f32.mrf.mxu1  ;;  %v5302_v5 = vpop.f32.mrf.mxu0 }
 0x1bc   :  { %v483_v7 = vadd.f32 %v479_v3, %v6188_v55  ;;  %v5837_v3 = vld [vmem:[%s6920_s1 + $0x50] sm:$0xff]   ;;  %v5838_v4 = vld [vmem:[%s6920_s1 + $0x48] sm:$0xff]   ;;  %v5839_v5 = vld [vmem:[%s6920_s1 + $0x40] sm:$0xff]  }
 0x1bd   :  { %v431_v8 = vpop.f32.mrf.mxu0  ;;  %v471_v9 = vpop.f32.mrf.mxu1 }
 0x1be   :  { %v492_v10 = vsel %vm485_vm4, %v483_v7, -inf  ;;  %v480_v33 = vmul.f32 0.10206208, %v471_v9 }
 0x1bf   :  { %v5308_v12 = vpop.f32.mrf.mxu1  ;;  %493 = vmax.xlane.f32.xlu0 %v492_v10  ;;  %v5303_v13 = vpop.f32.mrf.mxu0 }
 0x1c0   :  { %v484_v36 = vadd.f32 %v480_v33, %v6188_v55  ;;  %v5841_v12 = vld [vmem:[%s6922_s3 + $0x70] sm:$0xff]   ;;  %v5842_v13 = vld [vmem:[%s6922_s3 + $0x68] sm:$0xff]  }
 0x1c1   :  { %v474_v14 = vpop.f32.mrf.mxu1 }
 0x1c2   :  { %v495_v38 = vsel %vm485_vm4, %v484_v36, -inf  ;;  %v5843_v14 = vld [vmem:[%s6922_s3 + $0x60] sm:$0xff]  }
 0x1c3   :  { %v5309_v16 = vpop.f32.mrf.mxu1  ;;  %490 = vmax.xlane.f32.xlu0 %v489_v15  ;;  %v5844_v15 = vld [vmem:[%s6922_s3 + $0x58] sm:$0xff]  }
 0x1c4   :  { %v5845_v16 = vld [vmem:[%s6922_s3 + $0x50] sm:$0xff]  }
 0x240   :  { %v488_v21 = vpop.xlane.xlu0 %487 }
 0x241   :  { %v498_v23 = vsub.f32 %v481_v58, %v488_v21 }
 0x243   :  { %v502_v24 = vmul.f32 1.442695, %v498_v23 }
 0x245   :  { %5918 = vpow2.f32 %v502_v24 }
 0x248   :  { %v494_v25 = vpop.xlane.xlu0 %493 }
 0x249   :  { %v500_v26 = vsub.f32 %v483_v7, %v494_v25  ;;  %v5840_v7 = vld [vmem:[%s6922_s3 + $0x78] sm:$0xff]  }
 0x24b   :  { %v506_v27 = vmul.f32 1.442695, %v500_v26 }
 0x24c   :  { %v491_v28 = vpop.xlane.xlu0 %490 }
 0x24d   :  { %5920 = vpow2.f32 %v506_v27  ;;  %v499_v29 = vsub.f32 %v482_v11, %v491_v28 }
 0x24f   :  { %v504_v30 = vmul.f32 1.442695, %v499_v29 }
 0x251   :  { %5922 = vpow2.f32 %v504_v30 }
 0x252   :  { %v5919_v31 = vpop.eup %5918 }
 0x253   :  { %v510_v32 = vsel %vm485_vm4, %v5919_v31, 0.0 }
 0x254   :  { %511 = vadd.xlane.f32.xlu1 %v510_v32 }
 0x25a   :  { %v5921_v34 = vpop.eup %5920 }
 0x25b   :  { %v516_v35 = vsel %vm485_vm4, %v5921_v34, 0.0 }
 0x25c   :  { %517 = vadd.xlane.f32.xlu1 %v516_v35  ;;  %v4612_v35 = vld [vmem:[%s6921_s2 + $0x1] ss:$0 sm:$0xff] }
 0x25e   :  { %v5923_v37 = vpop.eup %5922 }
 0x25f   :  { %v513_v39 = vsel %vm485_vm4, %v5923_v37, 0.0 }
 0x260   :  { %496 = vmax.xlane.f32.xlu1 %v495_v38  ;;  %514 = vadd.xlane.f32.xlu0 %v513_v39 }
 0x2dd   :  { %v512_v40 = vpop.xlane.xlu1 %511 }
 0x2de   :  { %5924 = vrcp.f32 %v512_v40 }
 0x2e5   :  { %v518_v41 = vpop.xlane.xlu1 %517 }
 0x2e6   :  { %5926 = vrcp.f32 %v518_v41 }
 0x2e9   :  { %v497_v43 = vpop.xlane.xlu1 %496  ;;  %v515_v44 = vpop.xlane.xlu0 %514 }
 0x2ea   :  { %v501_v45 = vsub.f32 %v484_v36, %v497_v43  ;;  %5928 = vrcp.f32 %v515_v44 }
 0x2eb   :  { %v5925_v46 = vpop.eup %5924 }
 0x2ec   :  { %v508_v49 = vmul.f32 1.442695, %v501_v45  ;;  %v526_v50 = vmul.f32 %v5925_v46, %v5919_v31 }
 0x2ee   :  { %5930 = vpow2.f32 %v508_v49  ;;  %v530_v51 = vpack.c.bf16 %v526_v50, %v526_v50 }
 0x2f0   :  { %5313 = vmatmul.mubr.msk.bf16.vlgmr.msra.gmra.mxu0 %vm485_vm4, %v530_v51 }
 0x2f1   :  { %5323 = vmatpush3.bf16.msra.mxu0 %v631_v53  ;;  %5324 = vmatprep.mubr.msk.bf16.mxu0 %vm6037_vm0, %v6036_v22 }
 0x2f2   :  { %5334 = vmatprep.subr.bf16.mxu0 %v5832_v52 }
 0x2f3   :  { %v5927_v54 = vpop.eup %5926 }
 0x2f4   :  { %v528_v56 = vmul.f32 %v5927_v54, %v5921_v34 }
 0x2f6   :  { %v532_v42 = vpack.c.bf16 %v528_v56, %v528_v56 }
 0x2f7   :  { %v5929_v58 = vpop.eup %5928 }
 0x2f8   :  { %5325 = vmatmul.mubr.msk.bf16.vlgmr.msra.gmra.mxu0 %vm485_vm4, %v532_v42  ;;  %v527_v60 = vmul.f32 %v5929_v58, %v5923_v37 }
 0x2f9   :  { %5335 = vmatpush3.bf16.msra.mxu0 %v5832_v52  ;;  %5350 = vmatprep.mubr.bf16.mxu0 %v6100_v6 }
 0x2fa   :  { %5336 = vmatprep.subr.bf16.mxu0 %v5833_v57  ;;  %v531_v61 = vpack.c.bf16 %v527_v60, %v527_v60 }
 0x2fb   :  { %v5931_v63 = vpop.eup %5930 }
 0x2fc   :  { %5319 = vmatmul.mubr.msk.bf16.vlgmr.msra.gmra.mxu1 %vm485_vm4, %v531_v61  ;;  %v519_v1 = vsel %vm485_vm4, %v5931_v63, 0.0 }
 0x2fd   :  { %5329 = vmatpush3.bf16.msra.mxu1 %v677_v0  ;;  %5337 = vmatpush3.bf16.msra.mxu0 %v5833_v57  ;;  %v4638_v57 = vld [vmem:[%s6923_s4 + $0x1] ss:$0 sm:$0xff] }
 0x2fe   :  { %520 = vadd.xlane.f32.xlu1 %v519_v1  ;;  %5338 = vmatprep.subr.bf16.mxu0 %v5834_v62 }
 0x2ff   :  { %5330 = vmatprep.mubr.msk.bf16.mxu1 %vm6037_vm0, %v6036_v22  ;;  %5354 = vmatprep.subr.bf16.mxu1 %v5840_v7 }
 0x301   :  { %5339 = vmatpush3.bf16.msra.mxu0 %v5834_v62 }
 0x302   :  { %5340 = vmatprep.subr.bf16.mxu0 %v5835_v47 }
 0x305   :  { %5341 = vmatpush3.bf16.msra.mxu0 %v5835_v47 }
 0x306   :  { %5342 = vmatprep.subr.bf16.mxu0 %v5836_v2 }
 0x309   :  { %5343 = vmatpush3.bf16.msra.mxu0 %v5836_v2 }
 0x30a   :  { %5344 = vmatprep.subr.bf16.mxu0 %v5837_v3 }
 0x30d   :  { %5345 = vmatpush3.bf16.msra.mxu0 %v5837_v3 }
 0x30e   :  { %5346 = vmatprep.subr.bf16.mxu0 %v5838_v4 }
 0x311   :  { %5347 = vmatpush3.bf16.msra.mxu0 %v5838_v4 }
 0x312   :  { %5348 = vmatprep.subr.bf16.mxu0 %v5839_v5 }
 0x315   :  { %5349 = vmatpush3.bf16.msra.mxu0 %v5839_v5 }
 0x316   :  { %5374 = vmatprep.subr.bf16.mxu0 %v6036_v22 }
 0x318   :  { %5351 = vmatmul.mubr.bf16.vlgmr.msra.gmra.mxu0 %v6140_v19 }
 0x319   :  { %5376 = vmatprep.mubr.msk.bf16.mxu0 %vm6037_vm0, %v6036_v22 }
 0x387   :  { %v521_v8 = vpop.xlane.xlu1 %520 }
 0x388   :  { %5932 = vrcp.f32 %v521_v8 }
 0x395   :  { %v5933_v9 = vpop.eup %5932 }
 0x396   :  { %v529_v10 = vmul.f32 %v5933_v9, %v5931_v63 }
 0x398   :  { %v533_v11 = vpack.c.bf16 %v529_v10, %v529_v10 }
 0x39a   :  { %5331 = vmatmul.mubr.msk.bf16.vlgmr.msra.gmra.mxu1 %vm485_vm4, %v533_v11 }
 0x39b   :  { %5355 = vmatpush3.bf16.msra.mxu1 %v5840_v7  ;;  %5370 = vmatprep.mubr.bf16.mxu1 %v6100_v6 }
 0x39c   :  { %5356 = vmatprep.subr.bf16.mxu1 %v5841_v12 }
 0x39f   :  { %5357 = vmatpush3.bf16.msra.mxu1 %v5841_v12 }
 0x3a0   :  { %5358 = vmatprep.subr.bf16.mxu1 %v5842_v13 }
 0x3a3   :  { %5359 = vmatpush3.bf16.msra.mxu1 %v5842_v13 }
 0x3a4   :  { %5360 = vmatprep.subr.bf16.mxu1 %v5843_v14 }
 0x3a7   :  { %5361 = vmatpush3.bf16.msra.mxu1 %v5843_v14 }
 0x3a8   :  { %5362 = vmatprep.subr.bf16.mxu1 %v5844_v15 }
 0x3ab   :  { %5363 = vmatpush3.bf16.msra.mxu1 %v5844_v15 }
 0x3ac   :  { %5364 = vmatprep.subr.bf16.mxu1 %v5845_v16 }
 0x3af   :  { %5365 = vmatpush3.bf16.msra.mxu1 %v5845_v16 }
 0x3b0   :  { %v6269_v18 = vpop.f32.mrf.mxu0  ;;  %5366 = vmatprep.subr.bf16.mxu1 %v5846_v17 }
 0x3b2   :  { %v5314_v21 = vpop.f32.mrf.mxu0 }
 0x3b3   :  { %5367 = vmatpush3.bf16.msra.mxu1 %v5846_v17 }
 0x3b4   :  { %v578_v23 = vpop.f32.mrf.mxu0  ;;  %5368 = vmatprep.subr.bf16.mxu1 %v5847_v20 }
 0x3b6   :  { %v5315_v24 = vpop.f32.mrf.mxu0 }
 0x3b7   :  { %5369 = vmatpush3.bf16.msra.mxu1 %v5847_v20 }
 0x3b8   :  { %v6274_v25 = vpop.f32.mrf.mxu0  ;;  %5380 = vmatprep.subr.bf16.mxu1 %v6036_v22 }
 0x3ba   :  { %v5326_v26 = vpop.f32.mrf.mxu0  ;;  %5371 = vmatmul.mubr.bf16.vlgmr.msra.gmra.mxu1 %v6140_v19 }
 0x3bb   :  { %5382 = vmatprep.mubr.msk.bf16.mxu1 %vm6037_vm0, %v6036_v22 }
 0x3bc   :  { %v6280_v27 = vpop.f32.mrf.mxu1  ;;  %v670_v28 = vpop.f32.mrf.mxu0 }
 0x3bd   :  { %v719_v29 = vpack.c.bf16 %v6280_v27, %v6269_v18  ;;  %v5850_v18 = vld [vmem:[%s6920_s1 + $0xb8] sm:$0xff]  }
 0x3be   :  { %v5320_v30 = vpop.f32.mrf.mxu1  ;;  %v5327_v31 = vpop.f32.mrf.mxu0 }
 0x3c0   :  { %v624_v32 = vpop.f32.mrf.mxu1 }
 0x3c2   :  { %v5321_v33 = vpop.f32.mrf.mxu1 }
 0x3d8   :  { %v5352_v34 = vpop.f32.mrf.mxu0 }
 0x3d9   :  { %v839_v41 = vadd.f32 %v5352_v34, %v4612_v35 }
 0x3da   :  { %v830_v36 = vpop.f32.mrf.mxu0 }
 0x3db   :  { %v831_v37 = vadd.f32 %v4612_v35, %v830_v36  ;;  %v4974_v46 = vpack.c.bf16 %v839_v41, %v839_v41 }
 0x3dc   :  { %v5353_v38 = vpop.f32.mrf.mxu0 }
 0x3dd   :  { %v4972_v39 = vpack.c.bf16 %v831_v37, %v831_v37  ;;  %v842_v48 = vadd.f32 %v5353_v38, %v4612_v35  ;;  %v1078_v50 = vsel %vm304_vm1, %v4974_v46, 0 }
 0x3de   :  { %v833_v40 = vpop.f32.mrf.mxu0 }
 0x3df   :  { %v992_v43 = vsel %vm304_vm1, %v4972_v39, 0  ;;  %v834_v44 = vadd.f32 %v4612_v35, %v833_v40  ;;  %v4975_v51 = vpack.c.bf16 %v842_v48, %v842_v48 }
 0x3e0   :  { %5375 = vmatpush3.bf16.xpose.msra.mxu0 %v992_v43 }
 0x3e1   :  { %v4973_v45 = vpack.c.bf16 %v834_v44, %v834_v44  ;;  %5386 = vmatprep.subr.bf16.mxu0 %v6036_v22  ;;  %v1121_v52 = vsel %vm304_vm1, %v4975_v51, 0 }
 0x3e3   :  { %v1035_v49 = vsel %vm304_vm1, %v4973_v45, 0 }
 0x3e4   :  { %5381 = vmatpush3.bf16.xpose.msra.mxu1 %v1035_v49 }
 0x3e5   :  { %5392 = vmatprep.subr.bf16.mxu1 %v6036_v22 }
 0x3e7   :  { %5377 = vmatmul.mubr.msk.bf16.vlgmr.msra.gmra.mxu0 %vm304_vm1, %v4972_v39 }
 0x3e8   :  { %5387 = vmatpush3.bf16.xpose.msra.mxu0 %v1078_v50  ;;  %5388 = vmatprep.mubr.msk.bf16.mxu0 %vm6037_vm0, %v6036_v22 }
 0x3e9   :  { %5398 = vmatprep.subr.bf16.mxu0 %v6036_v22 }
 0x3eb   :  { %5383 = vmatmul.mubr.msk.bf16.vlgmr.msra.gmra.mxu1 %vm304_vm1, %v4973_v45 }
 0x3ec   :  { %5393 = vmatpush3.bf16.xpose.msra.mxu1 %v1121_v52  ;;  %5394 = vmatprep.mubr.msk.bf16.mxu1 %vm6037_vm0, %v6036_v22 }
 0x3ed   :  { %5404 = vmatprep.subr.bf16.mxu1 %v6036_v22 }
 0x3ef   :  { %5389 = vmatmul.mubr.msk.bf16.vlgmr.msra.gmra.mxu0 %vm304_vm1, %v4974_v46 }
 0x3f0   :  { %5400 = vmatprep.mubr.msk.bf16.mxu0 %vm6037_vm0, %v6036_v22 }
 0x3f3   :  { %5395 = vmatmul.mubr.msk.bf16.vlgmr.msra.gmra.mxu1 %vm304_vm1, %v4975_v51 }
 0x3f4   :  { %5406 = vmatprep.mubr.msk.bf16.mxu1 %vm6037_vm0, %v6036_v22 }
 0x45a   :  { %v6307_v53 = vpop.f32.mrf.mxu1 }
 0x45c   :  { %v5332_v54 = vpop.f32.mrf.mxu1 }
 0x45e   :  { %v716_v56 = vpop.f32.mrf.mxu1 }
 0x460   :  { %v5333_v42 = vpop.f32.mrf.mxu1 }
 0x47a   :  { %v5372_v58 = vpop.f32.mrf.mxu1 }
 0x47b   :  { %v6312_v59 = vadd.f32 %v5372_v58, %v4638_v57 }
 0x47c   :  { %v952_v60 = vpop.f32.mrf.mxu1 }
 0x47d   :  { %v953_v61 = vadd.f32 %v4638_v57, %v952_v60 }
 0x47e   :  { %v5373_v62 = vpop.f32.mrf.mxu1 }
 0x47f   :  { %v4976_v63 = vpack.c.bf16 %v953_v61, %v953_v61  ;;  %v6314_v0 = vadd.f32 %v5373_v62, %v4638_v57 }
 0x480   :  { %v955_v1 = vpop.f32.mrf.mxu1 }
 0x481   :  { %v1223_v47 = vsel %vm537_vm2, %v4976_v63, 0  ;;  %v956_v2 = vadd.f32 %v4638_v57, %v955_v1 }
 0x482   :  { %5399 = vmatpush3.bf16.msra.mxu0 %v1223_v47 }
 0x483   :  { %v4977_v3 = vpack.c.bf16 %v956_v2, %v956_v2  ;;  %5410 = vmatprep.subr.bf16.mxu0 %v6036_v22 }
 0x485   :  { %v1269_v4 = vsel %vm537_vm2, %v4977_v3, 0 }
 0x486   :  { %5405 = vmatpush3.bf16.msra.mxu1 %v1269_v4 }
 0x487   :  { %5416 = vmatprep.subr.bf16.mxu1 %v6036_v22 }
 0x4a7   :  { %v1028_v5 = vpop.f32.mrf.mxu0 }
 0x4a8   :  { %v1163_v7 = vmul.f32 0.10206208, %v1028_v5  ;;  %v4978_v5 = vpack.c.bf16 %v6312_v59, %v6312_v59  ;;  %v5848_v59 = vld [vmem:[%s6924_s5] sm:$0xff]  }
 0x4a9   :  { %v5378_v8 = vpop.f32.mrf.mxu0 }
 0x4aa   :  { %v1167_v9 = vadd.f32 %v1163_v7, %v6188_v55 }
 0x4ab   :  { %v1031_v10 = vpop.f32.mrf.mxu0  ;;  %v1071_v11 = vpop.f32.mrf.mxu1 }
 0x4ac   :  { %v1164_v12 = vmul.f32 0.10206208, %v1071_v11  ;;  %v1171_v13 = vsel %vm485_vm4, %v1167_v9, -inf  ;;  %v1315_v10 = vsel %vm537_vm2, %v4978_v5, 0  ;;  %v4979_v11 = vpack.c.bf16 %v6314_v0, %v6314_v0 }
 0x4ad   :  { %v5384_v14 = vpop.f32.mrf.mxu1  ;;  %1172 = vmax.xlane.f32.xlu0 %v1171_v13  ;;  %v5379_v15 = vpop.f32.mrf.mxu0 }
 0x4ae   :  { %v1168_v16 = vadd.f32 %v1164_v12, %v6188_v55  ;;  %v1361_v15 = vsel %vm537_vm2, %v4979_v11, 0 }
 0x4af   :  { %v1074_v17 = vpop.f32.mrf.mxu1  ;;  %v1114_v20 = vpop.f32.mrf.mxu0 }
 0x4b0   :  { %v1165_v21 = vmul.f32 0.10206208, %v1114_v20  ;;  %v1174_v23 = vsel %vm485_vm4, %v1168_v16, -inf }
 0x4b1   :  { %1175 = vmax.xlane.f32.xlu1 %v1174_v23  ;;  %v5385_v24 = vpop.f32.mrf.mxu1  ;;  %v5390_v26 = vpop.f32.mrf.mxu0  ;;  %v720_v23 = vpack.c.bf16 %v6307_v53, %v6274_v25 }
 0x4b2   :  { %v1169_v28 = vadd.f32 %v1165_v21, %v6188_v55  ;;  %v5849_v24 = vld [vmem:[%s6924_s5 + $0x8] sm:$0xff]  }
 0x4b3   :  { %v1117_v30 = vpop.f32.mrf.mxu0  ;;  %v1157_v31 = vpop.f32.mrf.mxu1 }
 0x4b4   :  { %v1166_v32 = vmul.f32 0.10206208, %v1157_v31  ;;  %v1177_v33 = vsel %vm485_vm4, %v1169_v28, -inf }
 0x4b5   :  { %v5396_v34 = vpop.f32.mrf.mxu1  ;;  %1178 = vmax.xlane.f32.xlu0 %v1177_v33  ;;  %v5391_v35 = vpop.f32.mrf.mxu0 }
 0x4b6   :  { %v1170_v36 = vadd.f32 %v1166_v32, %v6188_v55 }
 0x4b7   :  { %v1160_v37 = vpop.f32.mrf.mxu1 }
 0x4b8   :  { %v1180_v38 = vsel %vm485_vm4, %v1170_v36, -inf }
 0x4b9   :  { %1181 = vmax.xlane.f32.xlu1 %v1180_v38  ;;  %v5397_v39 = vpop.f32.mrf.mxu1  ;;  %v5851_v38 = vld [vmem:[%s6920_s1 + $0xb0] sm:$0xff]  }
 0x536   :  { %v1173_v40 = vpop.xlane.xlu0 %1172 }
 0x537   :  { %v1183_v41 = vsub.f32 %v1167_v9, %v1173_v40 }
 0x539   :  { %v1187_v43 = vmul.f32 1.442695, %v1183_v41 }
 0x53a   :  { %v1176_v44 = vpop.xlane.xlu1 %1175 }
 0x53b   :  { %5934 = vpow2.f32 %v1187_v43  ;;  %v1184_v45 = vsub.f32 %v1168_v16, %v1176_v44  ;;  %v5852_v43 = vld [vmem:[%s6920_s1 + $0xa8] sm:$0xff]  }
 0x53d   :  { %v1189_v46 = vmul.f32 1.442695, %v1184_v45  ;;  %v5853_v45 = vld [vmem:[%s6920_s1 + $0xa0] sm:$0xff]  }
 0x53e   :  { %v1179_v48 = vpop.xlane.xlu0 %1178 }
 0x53f   :  { %5936 = vpow2.f32 %v1189_v46  ;;  %v1185_v49 = vsub.f32 %v1169_v28, %v1179_v48  ;;  %v5854_v46 = vld [vmem:[%s6920_s1 + $0x98] sm:$0xff]   ;;  %v5855_v48 = vld [vmem:[%s6920_s1 + $0x90] sm:$0xff]  }
 0x541   :  { %v1191_v50 = vmul.f32 1.442695, %v1185_v49  ;;  %v5856_v49 = vld [vmem:[%s6920_s1 + $0x88] sm:$0xff]  }
 0x542   :  { %v1182_v51 = vpop.xlane.xlu1 %1181 }
 0x543   :  { %5938 = vpow2.f32 %v1191_v50  ;;  %v1186_v52 = vsub.f32 %v1170_v36, %v1182_v51  ;;  %v5857_v50 = vld [vmem:[%s6920_s1 + $0x80] sm:$0xff]   ;;  %v5858_v51 = vld [vmem:[%s6922_s3 + $0xb8] sm:$0xff]  }
 0x545   :  { %v1193_v54 = vmul.f32 1.442695, %v1186_v52  ;;  %v5859_v52 = vld [vmem:[%s6922_s3 + $0xb0] sm:$0xff]  }
 0x547   :  { %5940 = vpow2.f32 %v1193_v54  ;;  %v5860_v54 = vld [vmem:[%s6922_s3 + $0xa8] sm:$0xff]  }
 0x548   :  { %v5935_v56 = vpop.eup %5934 }
 0x549   :  { %v1195_v42 = vsel %vm485_vm4, %v5935_v56, 0.0 }
 0x54a   :  { %1196 = vadd.xlane.f32.xlu0 %v1195_v42  ;;  %v5862_v42 = vld [vmem:[%s6922_s3 + $0x98] sm:$0xff]  }
 0x54c   :  { %v5937_v57 = vpop.eup %5936 }
 0x54d   :  { %v1198_v58 = vsel %vm485_vm4, %v5937_v57, 0.0 }
 0x54e   :  { %1199 = vadd.xlane.f32.xlu1 %v1198_v58  ;;  %v5864_v58 = vld [vmem:[%s6922_s3 + $0x88] sm:$0xff]  }
 0x550   :  { %v5939_v60 = vpop.eup %5938 }
 0x551   :  { %v1201_v61 = vsel %vm485_vm4, %v5939_v60, 0.0 }
 0x552   :  { %1202 = vadd.xlane.f32.xlu0 %v1201_v61 }
 0x554   :  { %v5941_v62 = vpop.eup %5940 }
 0x555   :  { %v1204_v63 = vsel %vm485_vm4, %v5941_v62, 0.0 }
 0x556   :  { %1205 = vadd.xlane.f32.xlu1 %v1204_v63 }
 0x5d3   :  { %v1197_v1 = vpop.xlane.xlu0 %1196 }
 0x5d4   :  { %5942 = vrcp.f32 %v1197_v1 }
 0x5d7   :  { %v1200_v47 = vpop.xlane.xlu1 %1199 }
 0x5d8   :  { %5944 = vrcp.f32 %v1200_v47 }
 0x5db   :  { %v1203_v2 = vpop.xlane.xlu0 %1202 }
 0x5dc   :  { %5946 = vrcp.f32 %v1203_v2  ;;  %v4688_v2 = vld [vmem:[%s6921_s2 + $0x2] ss:$0 sm:$0xff] }
 0x5df   :  { %v1206_v3 = vpop.xlane.xlu1 %1205 }
 0x5e0   :  { %5948 = vrcp.f32 %v1206_v3 }
 0x5e1   :  { %v5943_v4 = vpop.eup %5942 }
 0x5e2   :  { %v1211_v7 = vmul.f32 %v5943_v4, %v5935_v56  ;;  %v5861_v56 = vld [vmem:[%s6922_s3 + $0xa0] sm:$0xff]  }
 0x5e4   :  { %v1215_v8 = vpack.c.bf16 %v1211_v7, %v1211_v7 }
 0x5e5   :  { %v5945_v9 = vpop.eup %5944 }
 0x5e6   :  { %5401 = vmatmul.mubr.msk.bf16.vlgmr.msra.gmra.mxu0 %vm485_vm4, %v1215_v8  ;;  %v1212_v12 = vmul.f32 %v5945_v9, %v5937_v57  ;;  %v5863_v57 = vld [vmem:[%s6922_s3 + $0x90] sm:$0xff]  }
 0x5e7   :  { %5411 = vmatpush3.bf16.msra.mxu0 %v1315_v10  ;;  %5412 = vmatprep.mubr.msk.bf16.mxu0 %vm6037_vm0, %v6036_v22 }
 0x5e8   :  { %v1216_v13 = vpack.c.bf16 %v1212_v12, %v1212_v12  ;;  %5422 = vmatprep.subr.bf16.mxu0 %v5849_v24 }
 0x5e9   :  { %v5947_v14 = vpop.eup %5946 }
 0x5ea   :  { %5407 = vmatmul.mubr.msk.bf16.vlgmr.msra.gmra.mxu1 %vm485_vm4, %v1216_v13  ;;  %v1213_v16 = vmul.f32 %v5947_v14, %v5939_v60  ;;  %v5865_v60 = vld [vmem:[%s6922_s3 + $0x80] sm:$0xff]  }
 0x5eb   :  { %5417 = vmatpush3.bf16.msra.mxu1 %v1361_v15  ;;  %5418 = vmatprep.mubr.msk.bf16.mxu1 %vm6037_vm0, %v6036_v22 }
 0x5ec   :  { %v1217_v0 = vpack.c.bf16 %v1213_v16, %v1213_v16  ;;  %5428 = vmatprep.subr.bf16.mxu1 %v5848_v59 }
 0x5ed   :  { %v5949_v17 = vpop.eup %5948 }
 0x5ee   :  { %5413 = vmatmul.mubr.msk.bf16.vlgmr.msra.gmra.mxu0 %vm485_vm4, %v1217_v0  ;;  %v1214_v20 = vmul.f32 %v5949_v17, %v5941_v62 }
 0x5ef   :  { %5423 = vmatpush3.bf16.msra.mxu0 %v5849_v24  ;;  %v4714_v24 = vld [vmem:[%s6923_s4 + $0x2] ss:$0 sm:$0xff] }
 0x5f0   :  { %v1218_v21 = vpack.c.bf16 %v1214_v20, %v1214_v20  ;;  %5434 = vmatprep.subr.bf16.mxu0 %v5850_v18 }
 0x5f2   :  { %5419 = vmatmul.mubr.msk.bf16.vlgmr.msra.gmra.mxu1 %vm485_vm4, %v1218_v21 }
 0x5f3   :  { %5430 = vmatprep.mubr.msk.bf16.mxu1 %vm304_vm1, %v719_v29  ;;  %5429 = vmatpush3.bf16.msra.mxu1 %v5848_v59 }
 0x5f4   :  { %5454 = vmatprep.subr.bf16.mxu1 %v5858_v51 }
 0x5fa   :  { %5431 = vmatmul.mubr.msk.bf16.vlgmr.msra.gmra.mxu1 %vm304_vm1, %v720_v23 }
 0x5fb   :  { %5470 = vmatprep.mubr.bf16.mxu1 %v6100_v6  ;;  %5455 = vmatpush3.bf16.msra.mxu1 %v5858_v51 }
 0x5fc   :  { %5456 = vmatprep.subr.bf16.mxu1 %v5859_v52 }
 0x5ff   :  { %5457 = vmatpush3.bf16.msra.mxu1 %v5859_v52 }
 0x600   :  { %5458 = vmatprep.subr.bf16.mxu1 %v5860_v54 }
 0x603   :  { %5459 = vmatpush3.bf16.msra.mxu1 %v5860_v54 }
 0x604   :  { %5460 = vmatprep.subr.bf16.mxu1 %v5861_v56 }
 0x607   :  { %5461 = vmatpush3.bf16.msra.mxu1 %v5861_v56 }
 0x608   :  { %5462 = vmatprep.subr.bf16.mxu1 %v5862_v42 }
 0x60b   :  { %5463 = vmatpush3.bf16.msra.mxu1 %v5862_v42 }
 0x60c   :  { %5464 = vmatprep.subr.bf16.mxu1 %v5863_v57 }
 0x60f   :  { %5465 = vmatpush3.bf16.msra.mxu1 %v5863_v57 }
 0x610   :  { %5466 = vmatprep.subr.bf16.mxu1 %v5864_v58 }
 0x613   :  { %5467 = vmatpush3.bf16.msra.mxu1 %v5864_v58 }
 0x614   :  { %5468 = vmatprep.subr.bf16.mxu1 %v5865_v60 }
 0x617   :  { %5469 = vmatpush3.bf16.msra.mxu1 %v5865_v60 }
 0x618   :  { %5480 = vmatprep.subr.bf16.mxu1 %v6036_v22 }
 0x61a   :  { %5471 = vmatmul.mubr.bf16.vlgmr.msra.gmra.mxu1 %v6140_v19 }
 0x61b   :  { %5482 = vmatprep.mubr.msk.bf16.mxu1 %vm6037_vm0, %v6036_v22 }
 0x6a6   :  { %v1259_v27 = vpop.f32.mrf.mxu0 }
 0x6a8   :  { %v5402_v29 = vpop.f32.mrf.mxu0 }
 0x6aa   :  { %v1262_v26 = vpop.f32.mrf.mxu0  ;;  %v1305_v28 = vpop.f32.mrf.mxu1 }
 0x6ab   :  { %v1403_v25 = vpack.c.bf16 %v1305_v28, %v1259_v27 }
 0x6ac   :  { %v5403_v53 = vpop.f32.mrf.mxu0  ;;  %v5408_v30 = vpop.f32.mrf.mxu1 }
 0x6ad   :  { %5424 = vmatprep.mubr.msk.bf16.mxu0 %vm304_vm1, %v1403_v25 }
 0x6ae   :  { %v1308_v31 = vpop.f32.mrf.mxu1  ;;  %v1351_v32 = vpop.f32.mrf.mxu0 }
 0x6b0   :  { %v5409_v33 = vpop.f32.mrf.mxu1  ;;  %v5414_v34 = vpop.f32.mrf.mxu0 }
 0x6b2   :  { %v1354_v35 = vpop.f32.mrf.mxu0  ;;  %v1397_v36 = vpop.f32.mrf.mxu1 }
 0x6b3   :  { %v1404_v37 = vpack.c.bf16 %v1397_v36, %v1351_v32 }
 0x6b4   :  { %v5415_v39 = vpop.f32.mrf.mxu0  ;;  %v5420_v40 = vpop.f32.mrf.mxu1 }
 0x6b5   :  { %5425 = vmatmul.mubr.msk.bf16.vlgmr.msra.gmra.mxu0 %vm304_vm1, %v1404_v37 }
 0x6b6   :  { %5435 = vmatpush3.bf16.msra.mxu0 %v5850_v18  ;;  %v1400_v41 = vpop.f32.mrf.mxu1  ;;  %5450 = vmatprep.mubr.bf16.mxu0 %v6100_v6 }
 0x6b7   :  { %5436 = vmatprep.subr.bf16.mxu0 %v5851_v38 }
 0x6b8   :  { %v5421_v44 = vpop.f32.mrf.mxu1 }
 0x6ba   :  { %5437 = vmatpush3.bf16.msra.mxu0 %v5851_v38  ;;  %v6450_v17 = vpop.f32.mrf.mxu1 }
 0x6bb   :  { %5438 = vmatprep.subr.bf16.mxu0 %v5852_v43 }
 0x6bc   :  { %v6452_v20 = vpop.f32.mrf.mxu1 }
 0x6be   :  { %5439 = vmatpush3.bf16.msra.mxu0 %v5852_v43  ;;  %v6454_v21 = vpop.f32.mrf.mxu1 }
 0x6bf   :  { %5440 = vmatprep.subr.bf16.mxu0 %v5853_v45 }
 0x6c0   :  { %v6456_v23 = vpop.f32.mrf.mxu1 }
 0x6c2   :  { %5441 = vmatpush3.bf16.msra.mxu0 %v5853_v45 }
 0x6c3   :  { %5442 = vmatprep.subr.bf16.mxu0 %v5854_v46 }
 0x6c6   :  { %5443 = vmatpush3.bf16.msra.mxu0 %v5854_v46 }
 0x6c7   :  { %5444 = vmatprep.subr.bf16.mxu0 %v5855_v48 }
 0x6ca   :  { %5445 = vmatpush3.bf16.msra.mxu0 %v5855_v48 }
 0x6cb   :  { %5446 = vmatprep.subr.bf16.mxu0 %v5856_v49 }
 0x6ce   :  { %5447 = vmatpush3.bf16.msra.mxu0 %v5856_v49 }
 0x6cf   :  { %5448 = vmatprep.subr.bf16.mxu0 %v5857_v50 }
 0x6d2   :  { %5449 = vmatpush3.bf16.msra.mxu0 %v5857_v50 }
 0x6d3   :  { %5474 = vmatprep.subr.bf16.mxu0 %v6036_v22 }
 0x6d5   :  { %5451 = vmatmul.mubr.bf16.vlgmr.msra.gmra.mxu0 %v6140_v19 }
 0x6d6   :  { %5476 = vmatprep.mubr.msk.bf16.mxu0 %vm6037_vm0, %v6036_v22 }
 0x6da   :  { %v5472_v18 = vpop.f32.mrf.mxu1 }
 0x6db   :  { %v6461_v27 = vadd.f32 %v5472_v18, %v4714_v24 }
 0x6dc   :  { %v1759_v29 = vpop.f32.mrf.mxu1 }
 0x6dd   :  { %v1760_v26 = vadd.f32 %v4714_v24, %v1759_v29 }
 0x6de   :  { %v5473_v28 = vpop.f32.mrf.mxu1 }
 0x6df   :  { %v4984_v25 = vpack.c.bf16 %v1760_v26, %v1760_v26  ;;  %v6463_v53 = vadd.f32 %v5473_v28, %v4714_v24 }
 0x6e0   :  { %v1762_v30 = vpop.f32.mrf.mxu1 }
 0x6e1   :  { %v2030_v31 = vsel %vm537_vm2, %v4984_v25, 0  ;;  %v1763_v32 = vadd.f32 %v4714_v24, %v1762_v30 }
 0x6e3   :  { %v4985_v33 = vpack.c.bf16 %v1763_v32, %v1763_v32 }
 0x6e5   :  { %v2076_v34 = vsel %vm537_vm2, %v4985_v33, 0 }
 0x775   :  { %v6419_v61 = vpop.f32.mrf.mxu0 }
 0x777   :  { %v6421_v62 = vpop.f32.mrf.mxu0 }
 0x779   :  { %v6423_v63 = vpop.f32.mrf.mxu0 }
 0x77b   :  { %v6425_v1 = vpop.f32.mrf.mxu0 }
 0x795   :  { %v5452_v47 = vpop.f32.mrf.mxu0 }
 0x796   :  { %v1646_v9 = vadd.f32 %v5452_v47, %v4688_v2 }
 0x797   :  { %v1637_v3 = vpop.f32.mrf.mxu0 }
 0x798   :  { %v1638_v4 = vadd.f32 %v4688_v2, %v1637_v3  ;;  %v4982_v13 = vpack.c.bf16 %v1646_v9, %v1646_v9 }
 0x799   :  { %v5453_v5 = vpop.f32.mrf.mxu0 }
 0x79a   :  { %v4980_v7 = vpack.c.bf16 %v1638_v4, %v1638_v4  ;;  %v1649_v59 = vadd.f32 %v5453_v5, %v4688_v2  ;;  %v1885_v15 = vsel %vm304_vm1, %v4982_v13, 0 }
 0x79b   :  { %v1640_v8 = vpop.f32.mrf.mxu0 }
 0x79c   :  { %v1799_v10 = vsel %vm304_vm1, %v4980_v7, 0  ;;  %v1641_v11 = vadd.f32 %v4688_v2, %v1640_v8  ;;  %v4983_v16 = vpack.c.bf16 %v1649_v59, %v1649_v59 }
 0x79d   :  { %5475 = vmatpush3.bf16.xpose.msra.mxu0 %v1799_v10 }
 0x79e   :  { %v4981_v12 = vpack.c.bf16 %v1641_v11, %v1641_v11  ;;  %5486 = vmatprep.subr.bf16.mxu0 %v6036_v22  ;;  %v1928_v0 = vsel %vm304_vm1, %v4983_v16, 0 }
 0x7a0   :  { %v1842_v14 = vsel %vm304_vm1, %v4981_v12, 0 }
 0x7a1   :  { %5481 = vmatpush3.bf16.xpose.msra.mxu1 %v1842_v14 }
 0x7a2   :  { %5492 = vmatprep.subr.bf16.mxu1 %v6036_v22 }
 0x7a4   :  { %5477 = vmatmul.mubr.msk.bf16.vlgmr.msra.gmra.mxu0 %vm304_vm1, %v4980_v7 }
 0x7a5   :  { %5487 = vmatpush3.bf16.xpose.msra.mxu0 %v1885_v15  ;;  %5488 = vmatprep.mubr.msk.bf16.mxu0 %vm6037_vm0, %v6036_v22 }
 0x7a6   :  { %5498 = vmatprep.subr.bf16.mxu0 %v6036_v22 }
 0x7a8   :  { %5483 = vmatmul.mubr.msk.bf16.vlgmr.msra.gmra.mxu1 %vm304_vm1, %v4981_v12 }
 0x7a9   :  { %5493 = vmatpush3.bf16.xpose.msra.mxu1 %v1928_v0  ;;  %5494 = vmatprep.mubr.msk.bf16.mxu1 %vm6037_vm0, %v6036_v22 }
 0x7aa   :  { %5504 = vmatprep.subr.bf16.mxu1 %v6036_v22 }
 0x7ac   :  { %5489 = vmatmul.mubr.msk.bf16.vlgmr.msra.gmra.mxu0 %vm304_vm1, %v4982_v13 }
 0x7ad   :  { %5500 = vmatprep.mubr.msk.bf16.mxu0 %vm6037_vm0, %v6036_v22  ;;  %5499 = vmatpush3.bf16.msra.mxu0 %v2030_v31 }
 0x7ae   :  { %5510 = vmatprep.subr.bf16.mxu0 %v6036_v22 }
 0x7b0   :  { %5495 = vmatmul.mubr.msk.bf16.vlgmr.msra.gmra.mxu1 %vm304_vm1, %v4983_v16 }
 0x7b1   :  { %5506 = vmatprep.mubr.msk.bf16.mxu1 %vm6037_vm0, %v6036_v22  ;;  %5505 = vmatpush3.bf16.msra.mxu1 %v2076_v34 }
 0x7b2   :  { %5516 = vmatprep.subr.bf16.mxu1 %v6036_v22 }
 0x864   :  { %v1835_v35 = vpop.f32.mrf.mxu0 }
 0x865   :  { %v1970_v36 = vmul.f32 0.10206208, %v1835_v35 }
 0x866   :  { %v5478_v37 = vpop.f32.mrf.mxu0 }
 0x867   :  { %v1974_v38 = vadd.f32 %v1970_v36, %v6188_v55 }
 0x868   :  { %v1838_v39 = vpop.f32.mrf.mxu0  ;;  %v1878_v40 = vpop.f32.mrf.mxu1 }
 0x869   :  { %v1971_v41 = vmul.f32 0.10206208, %v1878_v40  ;;  %v1978_v43 = vsel %vm485_vm4, %v1974_v38, -inf }
 0x86a   :  { %v5484_v44 = vpop.f32.mrf.mxu1  ;;  %1979 = vmax.xlane.f32.xlu1 %v1978_v43  ;;  %v5479_v45 = vpop.f32.mrf.mxu0 }
 0x86b   :  { %v1975_v46 = vadd.f32 %v1971_v41, %v6188_v55  ;;  %v4987_v44 = vpack.c.bf16 %v6463_v53, %v6463_v53 }
 0x86c   :  { %v1881_v48 = vpop.f32.mrf.mxu1  ;;  %v1921_v49 = vpop.f32.mrf.mxu0 }
 0x86d   :  { %v1972_v50 = vmul.f32 0.10206208, %v1921_v49  ;;  %v1981_v51 = vsel %vm485_vm4, %v1975_v46, -inf  ;;  %v2168_v49 = vsel %vm537_vm2, %v4987_v44, 0 }
 0x86e   :  { %1982 = vmax.xlane.f32.xlu0 %v1981_v51  ;;  %v5485_v52 = vpop.f32.mrf.mxu1  ;;  %v5490_v54 = vpop.f32.mrf.mxu0 }
 0x86f   :  { %v1976_v56 = vadd.f32 %v1972_v50, %v6188_v55 }
 0x870   :  { %v1924_v42 = vpop.f32.mrf.mxu0  ;;  %v1964_v57 = vpop.f32.mrf.mxu1 }
 0x871   :  { %v1973_v58 = vmul.f32 0.10206208, %v1964_v57  ;;  %v1984_v60 = vsel %vm485_vm4, %v1976_v56, -inf  ;;  %v5868_v42 = vld [vmem:[%s6920_s1 + $0xe8] sm:$0xff]   ;;  %v5869_v57 = vld [vmem:[%s6920_s1 + $0xe0] sm:$0xff]  }
 0x872   :  { %v5496_v47 = vpop.f32.mrf.mxu1  ;;  %1985 = vmax.xlane.f32.xlu1 %v1984_v60  ;;  %v5491_v2 = vpop.f32.mrf.mxu0  ;;  %v5871_v60 = vld [vmem:[%s6920_s1 + $0xd0] sm:$0xff]  }
 0x873   :  { %v1977_v3 = vadd.f32 %v1973_v58, %v6188_v55  ;;  %v5870_v58 = vld [vmem:[%s6920_s1 + $0xd8] sm:$0xff]   ;;  %v5872_v47 = vld [vmem:[%s6920_s1 + $0xc8] sm:$0xff]   ;;  %v5873_v2 = vld [vmem:[%s6920_s1 + $0xc0] sm:$0xff]  }
 0x874   :  { %v1967_v4 = vpop.f32.mrf.mxu1 }
 0x875   :  { %v1987_v5 = vsel %vm485_vm4, %v1977_v3, -inf  ;;  %v5875_v4 = vld [vmem:[%s6922_s3 + $0xf8] sm:$0xff]  }
 0x876   :  { %1988 = vmax.xlane.f32.xlu0 %v1987_v5  ;;  %v5497_v7 = vpop.f32.mrf.mxu1 }
 0x8f3   :  { %v1980_v8 = vpop.xlane.xlu1 %1979 }
 0x8f4   :  { %v1990_v9 = vsub.f32 %v1974_v38, %v1980_v8  ;;  %v4986_v38 = vpack.c.bf16 %v6461_v27, %v6461_v27  ;;  %v5866_v27 = vld [vmem:[%s6920_s1 + $0xf8] sm:$0xff]  }
 0x8f6   :  { %v1994_v10 = vmul.f32 1.442695, %v1990_v9  ;;  %v2122_v43 = vsel %vm537_vm2, %v4986_v38, 0 }
 0x8f7   :  { %v1983_v11 = vpop.xlane.xlu0 %1982 }
 0x8f8   :  { %5950 = vpow2.f32 %v1994_v10  ;;  %v1991_v12 = vsub.f32 %v1975_v46, %v1983_v11 }
 0x8fa   :  { %v1996_v13 = vmul.f32 1.442695, %v1991_v12 }
 0x8fb   :  { %v1986_v59 = vpop.xlane.xlu1 %1985 }
 0x8fc   :  { %5952 = vpow2.f32 %v1996_v13  ;;  %v1992_v14 = vsub.f32 %v1976_v56, %v1986_v59  ;;  %v5867_v56 = vld [vmem:[%s6920_s1 + $0xf0] sm:$0xff]  }
 0x8fe   :  { %v1998_v15 = vmul.f32 1.442695, %v1992_v14 }
 0x8ff   :  { %v1989_v16 = vpop.xlane.xlu0 %1988 }
 0x900   :  { %5954 = vpow2.f32 %v1998_v15  ;;  %v1993_v0 = vsub.f32 %v1977_v3, %v1989_v16  ;;  %v5874_v3 = vld [vmem:[%s6924_s5 + $0x10] sm:$0xff]  }
 0x902   :  { %v2000_v24 = vmul.f32 1.442695, %v1993_v0 }
 0x904   :  { %5956 = vpow2.f32 %v2000_v24 }
 0x905   :  { %v5951_v18 = vpop.eup %5950 }
 0x906   :  { %v2002_v29 = vsel %vm485_vm4, %v5951_v18, 0.0 }
 0x907   :  { %2003 = vadd.xlane.f32.xlu1 %v2002_v29 }
 0x909   :  { %v5953_v26 = vpop.eup %5952 }
 0x90a   :  { %v2005_v28 = vsel %vm485_vm4, %v5953_v26, 0.0 }
 0x90b   :  { %2006 = vadd.xlane.f32.xlu0 %v2005_v28 }
 0x90d   :  { %v5955_v25 = vpop.eup %5954 }
 0x90e   :  { %v2008_v30 = vsel %vm485_vm4, %v5955_v25, 0.0 }
 0x90f   :  { %2009 = vadd.xlane.f32.xlu1 %v2008_v30 }
 0x911   :  { %v5957_v31 = vpop.eup %5956 }
 0x912   :  { %v2011_v32 = vsel %vm485_vm4, %v5957_v31, 0.0 }
 0x913   :  { %2012 = vadd.xlane.f32.xlu0 %v2011_v32  ;;  %v5879_v32 = vld [vmem:[%s6922_s3 + $0xd8] sm:$0xff]  }
 0x990   :  { %v2004_v33 = vpop.xlane.xlu1 %2003 }
 0x991   :  { %5958 = vrcp.f32 %v2004_v33  ;;  %v5880_v33 = vld [vmem:[%s6922_s3 + $0xd0] sm:$0xff]  }
 0x994   :  { %v2007_v34 = vpop.xlane.xlu0 %2006 }
 0x995   :  { %5960 = vrcp.f32 %v2007_v34  ;;  %v5881_v34 = vld [vmem:[%s6922_s3 + $0xc8] sm:$0xff]  }
 0x998   :  { %v2010_v35 = vpop.xlane.xlu1 %2009 }
 0x999   :  { %5962 = vrcp.f32 %v2010_v35  ;;  %v5882_v35 = vld [vmem:[%s6922_s3 + $0xc0] sm:$0xff]  }
 0x99c   :  { %v2013_v36 = vpop.xlane.xlu0 %2012 }
 0x99d   :  { %5964 = vrcp.f32 %v2013_v36 }
 0x99e   :  { %v5959_v37 = vpop.eup %5958 }
 0x99f   :  { %v2018_v39 = vmul.f32 %v5959_v37, %v5951_v18  ;;  %v5876_v18 = vld [vmem:[%s6922_s3 + $0xf0] sm:$0xff]   ;;  %v4761_v37 = vld [vmem:[%s6921_s2 + $0x3] ss:$0 sm:$0xff] }
 0x9a1   :  { %v2022_v40 = vpack.c.bf16 %v2018_v39, %v2018_v39 }
 0x9a2   :  { %v5961_v41 = vpop.eup %5960 }
 0x9a3   :  { %5501 = vmatmul.mubr.msk.bf16.vlgmr.msra.gmra.mxu0 %vm485_vm4, %v2022_v40  ;;  %v2019_v45 = vmul.f32 %v5961_v41, %v5953_v26 }
 0x9a4   :  { %5511 = vmatpush3.bf16.msra.mxu0 %v2122_v43  ;;  %5512 = vmatprep.mubr.msk.bf16.mxu0 %vm6037_vm0, %v6036_v22 }
 0x9a5   :  { %v2023_v46 = vpack.c.bf16 %v2019_v45, %v2019_v45  ;;  %5522 = vmatprep.subr.bf16.mxu0 %v5874_v3 }
 0x9a6   :  { %v5963_v48 = vpop.eup %5962 }
 0x9a7   :  { %5507 = vmatmul.mubr.msk.bf16.vlgmr.msra.gmra.mxu1 %vm485_vm4, %v2023_v46  ;;  %v2020_v50 = vmul.f32 %v5963_v48, %v5955_v25  ;;  %v5877_v25 = vld [vmem:[%s6922_s3 + $0xe8] sm:$0xff]  }
 0x9a8   :  { %5517 = vmatpush3.bf16.msra.mxu1 %v2168_v49  ;;  %5518 = vmatprep.mubr.msk.bf16.mxu1 %vm6037_vm0, %v6036_v22 }
 0x9a9   :  { %v2024_v53 = vpack.c.bf16 %v2020_v50, %v2020_v50  ;;  %5528 = vmatprep.subr.bf16.mxu1 %v5866_v27 }
 0x9aa   :  { %v5965_v51 = vpop.eup %5964 }
 0x9ab   :  { %5513 = vmatmul.mubr.msk.bf16.vlgmr.msra.gmra.mxu0 %vm485_vm4, %v2024_v53  ;;  %v2021_v52 = vmul.f32 %v5965_v51, %v5957_v31  ;;  %v5878_v31 = vld [vmem:[%s6922_s3 + $0xe0] sm:$0xff]  }
 0x9ac   :  { %5523 = vmatpush3.bf16.msra.mxu0 %v5874_v3  ;;  %v1519_v3 = vadd.f32 %v6456_v23, %v6425_v1 }
 0x9ad   :  { %v2025_v54 = vpack.c.bf16 %v2021_v52, %v2021_v52  ;;  %5548 = vmatprep.subr.bf16.mxu0 %v5875_v4 }
 0x9af   :  { %5519 = vmatmul.mubr.msk.bf16.vlgmr.msra.gmra.mxu1 %vm485_vm4, %v2025_v54  ;;  %v1524_v54 = vadd.f32 %v6450_v17, %v6419_v61 }
 0x9b0   :  { %5529 = vmatpush3.bf16.msra.mxu1 %v5866_v27  ;;  %5544 = vmatprep.mubr.bf16.mxu1 %v6100_v6 }
 0x9b1   :  { %5530 = vmatprep.subr.bf16.mxu1 %v5867_v56 }
 0x9b4   :  { %5531 = vmatpush3.bf16.msra.mxu1 %v5867_v56 }
 0x9b5   :  { %5532 = vmatprep.subr.bf16.mxu1 %v5868_v42 }
 0x9b8   :  { %5533 = vmatpush3.bf16.msra.mxu1 %v5868_v42  ;;  %v1516_v42 = vadd.f32 %v6452_v20, %v6421_v62  ;;  %v4787_v62 = vld [vmem:[%s6923_s4 + $0x3] ss:$0 sm:$0xff] }
 0x9b9   :  { %5534 = vmatprep.subr.bf16.mxu1 %v5869_v57 }
 0x9bc   :  { %5535 = vmatpush3.bf16.msra.mxu1 %v5869_v57 }
 0x9bd   :  { %5536 = vmatprep.subr.bf16.mxu1 %v5870_v58 }
 0x9c0   :  { %5537 = vmatpush3.bf16.msra.mxu1 %v5870_v58 }
 0x9c1   :  { %5538 = vmatprep.subr.bf16.mxu1 %v5871_v60 }
 0x9c4   :  { %5539 = vmatpush3.bf16.msra.mxu1 %v5871_v60  ;;  %v1527_v60 = vadd.f32 %v6454_v21, %v6423_v63 }
 0x9c5   :  { %5540 = vmatprep.subr.bf16.mxu1 %v5872_v47 }
 0x9c8   :  { %5541 = vmatpush3.bf16.msra.mxu1 %v5872_v47 }
 0x9c9   :  { %5542 = vmatprep.subr.bf16.mxu1 %v5873_v2 }
 0x9cc   :  { %5543 = vmatpush3.bf16.msra.mxu1 %v5873_v2 }
 0x9cd   :  { %5568 = vmatprep.subr.bf16.mxu1 %v6036_v22 }
 0x9cf   :  { %5545 = vmatmul.mubr.bf16.vlgmr.msra.gmra.mxu1 %v6140_v19 }
 0x9d0   :  { %5570 = vmatprep.mubr.msk.bf16.mxu1 %vm6037_vm0, %v6036_v22 }
 0xa63   :  { %v2066_v5 = vpop.f32.mrf.mxu0 }
 0xa65   :  { %v5502_v7 = vpop.f32.mrf.mxu0 }
 0xa67   :  { %v2069_v8 = vpop.f32.mrf.mxu0  ;;  %v2112_v9 = vpop.f32.mrf.mxu1 }
 0xa68   :  { %v2210_v10 = vpack.c.bf16 %v2112_v9, %v2066_v5 }
 0xa69   :  { %v5503_v11 = vpop.f32.mrf.mxu0  ;;  %v5508_v12 = vpop.f32.mrf.mxu1 }
 0xa6a   :  { %5524 = vmatprep.mubr.msk.bf16.mxu0 %vm304_vm1, %v2210_v10 }
 0xa6b   :  { %v2115_v13 = vpop.f32.mrf.mxu1  ;;  %v2158_v59 = vpop.f32.mrf.mxu0 }
 0xa6d   :  { %v5509_v14 = vpop.f32.mrf.mxu1  ;;  %v5514_v15 = vpop.f32.mrf.mxu0 }
 0xa6f   :  { %v2161_v16 = vpop.f32.mrf.mxu0  ;;  %v2204_v0 = vpop.f32.mrf.mxu1 }
 0xa70   :  { %v2211_v24 = vpack.c.bf16 %v2204_v0, %v2158_v59 }
 0xa71   :  { %v5515_v29 = vpop.f32.mrf.mxu0  ;;  %v5520_v26 = vpop.f32.mrf.mxu1 }
 0xa72   :  { %5525 = vmatmul.mubr.msk.bf16.vlgmr.msra.gmra.mxu0 %vm304_vm1, %v2211_v24 }
 0xa73   :  { %v2207_v28 = vpop.f32.mrf.mxu1  ;;  %5549 = vmatpush3.bf16.msra.mxu0 %v5875_v4  ;;  %5564 = vmatprep.mubr.bf16.mxu0 %v6100_v6 }
 0xa74   :  { %5550 = vmatprep.subr.bf16.mxu0 %v5876_v18 }
 0xa75   :  { %v5521_v30 = vpop.f32.mrf.mxu1 }
 0xa77   :  { %5551 = vmatpush3.bf16.msra.mxu0 %v5876_v18 }
 0xa78   :  { %5552 = vmatprep.subr.bf16.mxu0 %v5877_v25 }
 0xa7b   :  { %5553 = vmatpush3.bf16.msra.mxu0 %v5877_v25 }
 0xa7c   :  { %5554 = vmatprep.subr.bf16.mxu0 %v5878_v31 }
 0xa7f   :  { %5555 = vmatpush3.bf16.msra.mxu0 %v5878_v31 }
 0xa80   :  { %5556 = vmatprep.subr.bf16.mxu0 %v5879_v32 }
 0xa83   :  { %5557 = vmatpush3.bf16.msra.mxu0 %v5879_v32 }
 0xa84   :  { %5558 = vmatprep.subr.bf16.mxu0 %v5880_v33 }
 0xa87   :  { %5559 = vmatpush3.bf16.msra.mxu0 %v5880_v33 }
 0xa88   :  { %5560 = vmatprep.subr.bf16.mxu0 %v5881_v34 }
 0xa8b   :  { %5561 = vmatpush3.bf16.msra.mxu0 %v5881_v34 }
 0xa8c   :  { %5562 = vmatprep.subr.bf16.mxu0 %v5882_v35 }
 0xa8f   :  { %v5546_v36 = vpop.f32.mrf.mxu1  ;;  %5563 = vmatpush3.bf16.msra.mxu0 %v5882_v35 }
 0xa90   :  { %5574 = vmatprep.subr.bf16.mxu0 %v6036_v22  ;;  %v2396_v44 = vadd.f32 %v5546_v36, %v4761_v37 }
 0xa91   :  { %v2387_v38 = vpop.f32.mrf.mxu1 }
 0xa92   :  { %v2388_v39 = vadd.f32 %v4761_v37, %v2387_v38  ;;  %5565 = vmatmul.mubr.bf16.vlgmr.msra.gmra.mxu0 %v6140_v19  ;;  %v4990_v48 = vpack.c.bf16 %v2396_v44, %v2396_v44 }
 0xa93   :  { %v5547_v40 = vpop.f32.mrf.mxu1  ;;  %5576 = vmatprep.mubr.msk.bf16.mxu0 %vm6037_vm0, %v6036_v22 }
 0xa94   :  { %v4988_v41 = vpack.c.bf16 %v2388_v39, %v2388_v39  ;;  %v2399_v49 = vadd.f32 %v5547_v40, %v4761_v37  ;;  %v2635_v53 = vsel %vm304_vm1, %v4990_v48, 0 }
 0xa95   :  { %v2390_v43 = vpop.f32.mrf.mxu1 }
 0xa96   :  { %v2549_v45 = vsel %vm304_vm1, %v4988_v41, 0  ;;  %v2391_v46 = vadd.f32 %v4761_v37, %v2390_v43  ;;  %v4991_v51 = vpack.c.bf16 %v2399_v49, %v2399_v49 }
 0xa97   :  { %5569 = vmatpush3.bf16.xpose.msra.mxu1 %v2549_v45 }
 0xa98   :  { %v4989_v27 = vpack.c.bf16 %v2391_v46, %v2391_v46  ;;  %5580 = vmatprep.subr.bf16.mxu1 %v6036_v22  ;;  %v2678_v52 = vsel %vm304_vm1, %v4991_v51, 0 }
 0xa9a   :  { %v2592_v50 = vsel %vm304_vm1, %v4989_v27, 0 }
 0xa9b   :  { %5575 = vmatpush3.bf16.xpose.msra.mxu0 %v2592_v50 }
 0xa9c   :  { %5586 = vmatprep.subr.bf16.mxu0 %v6036_v22 }
 0xa9e   :  { %5571 = vmatmul.mubr.msk.bf16.vlgmr.msra.gmra.mxu1 %vm304_vm1, %v4988_v41 }
 0xa9f   :  { %5581 = vmatpush3.bf16.xpose.msra.mxu1 %v2635_v53  ;;  %5582 = vmatprep.mubr.msk.bf16.mxu1 %vm6037_vm0, %v6036_v22 }
 0xaa0   :  { %5592 = vmatprep.subr.bf16.mxu1 %v6036_v22 }
 0xaa2   :  { %5577 = vmatmul.mubr.msk.bf16.vlgmr.msra.gmra.mxu0 %vm304_vm1, %v4989_v27 }
 0xaa3   :  { %5587 = vmatpush3.bf16.xpose.msra.mxu0 %v2678_v52  ;;  %5588 = vmatprep.mubr.msk.bf16.mxu0 %vm6037_vm0, %v6036_v22 }
 0xaa4   :  { %5598 = vmatprep.subr.bf16.mxu0 %v6036_v22 }
 0xaa6   :  { %5583 = vmatmul.mubr.msk.bf16.vlgmr.msra.gmra.mxu1 %vm304_vm1, %v4990_v48 }
 0xaa7   :  { %5594 = vmatprep.mubr.msk.bf16.mxu1 %vm6037_vm0, %v6036_v22 }
 0xaaa   :  { %5589 = vmatmul.mubr.msk.bf16.vlgmr.msra.gmra.mxu0 %vm304_vm1, %v4991_v51 }
 0xaab   :  { %5600 = vmatprep.mubr.msk.bf16.mxu0 %vm6037_vm0, %v6036_v22 }
 0xb32   :  { %v5526_v56 = vpop.f32.mrf.mxu0 }
 0xb33   :  { %v6585_v57 = vadd.f32 %v5526_v56, %v1524_v54 }
 0xb34   :  { %v2261_v58 = vpop.f32.mrf.mxu0 }
 0xb35   :  { %v6589_v47 = vadd.f32 %v2261_v58, %v1516_v42 }
 0xb36   :  { %v5527_v2 = vpop.f32.mrf.mxu0 }
 0xb37   :  { %v6593_v4 = vadd.f32 %v5527_v2, %v1527_v60 }
 0xb38   :  { %v2264_v5 = vpop.f32.mrf.mxu0 }
 0xb39   :  { %v6595_v61 = vadd.f32 %v2264_v5, %v1519_v3 }
 0xb52   :  { %v5566_v17 = vpop.f32.mrf.mxu0 }
 0xb53   :  { %v6600_v20 = vadd.f32 %v5566_v17, %v4787_v62 }
 0xb54   :  { %v2509_v7 = vpop.f32.mrf.mxu0 }
 0xb55   :  { %v2510_v63 = vadd.f32 %v4787_v62, %v2509_v7 }
 0xb56   :  { %v5567_v21 = vpop.f32.mrf.mxu0 }
 0xb57   :  { %v4992_v8 = vpack.c.bf16 %v2510_v63, %v2510_v63  ;;  %v6602_v9 = vadd.f32 %v5567_v21, %v4787_v62 }
 0xb58   :  { %v2512_v10 = vpop.f32.mrf.mxu0 }
 0xb59   :  { %v2780_v1 = vsel %vm537_vm2, %v4992_v8, 0  ;;  %v2513_v23 = vadd.f32 %v4787_v62, %v2512_v10 }
 0xb5a   :  { %5593 = vmatpush3.bf16.msra.mxu1 %v2780_v1 }
 0xb5b   :  { %v4993_v11 = vpack.c.bf16 %v2513_v23, %v2513_v23  ;;  %5604 = vmatprep.subr.bf16.mxu1 %v6036_v22 }
 0xb5d   :  { %v2826_v12 = vsel %vm537_vm2, %v4993_v11, 0 }
 0xb5e   :  { %v2585_v13 = vpop.f32.mrf.mxu1  ;;  %5599 = vmatpush3.bf16.msra.mxu0 %v2826_v12  ;;  %v4994_v12 = vpack.c.bf16 %v6600_v20, %v6600_v20  ;;  %v5883_v20 = vld [vmem:[%s6920_s1 + $0x138] sm:$0xff]  }
 0xb5f   :  { %v2720_v59 = vmul.f32 0.10206208, %v2585_v13  ;;  %5610 = vmatprep.subr.bf16.mxu0 %v6036_v22 }
 0xb60   :  { %v5572_v14 = vpop.f32.mrf.mxu1 }
 0xb61   :  { %v2724_v15 = vadd.f32 %v2720_v59, %v6188_v55 }
 0xb62   :  { %v2588_v16 = vpop.f32.mrf.mxu1  ;;  %v2628_v0 = vpop.f32.mrf.mxu0 }
 0xb63   :  { %v2721_v24 = vmul.f32 0.10206208, %v2628_v0  ;;  %v2728_v18 = vsel %vm485_vm4, %v2724_v15, -inf  ;;  %v4995_v16 = vpack.c.bf16 %v6602_v9, %v6602_v9 }
 0xb64   :  { %v5573_v29 = vpop.f32.mrf.mxu1  ;;  %2729 = vmax.xlane.f32.xlu1 %v2728_v18  ;;  %v5578_v26 = vpop.f32.mrf.mxu0 }
 0xb65   :  { %v2725_v28 = vadd.f32 %v2721_v24, %v6188_v55  ;;  %v2918_v29 = vsel %vm537_vm2, %v4995_v16, 0 }
 0xb66   :  { %v2631_v25 = vpop.f32.mrf.mxu0  ;;  %v2671_v30 = vpop.f32.mrf.mxu1 }
 0xb67   :  { %v2722_v31 = vmul.f32 0.10206208, %v2671_v30  ;;  %v2731_v32 = vsel %vm485_vm4, %v2725_v28, -inf }
 0xb68   :  { %v5584_v33 = vpop.f32.mrf.mxu1  ;;  %2732 = vmax.xlane.f32.xlu0 %v2731_v32  ;;  %v5579_v34 = vpop.f32.mrf.mxu0  ;;  %v5885_v32 = vld [vmem:[%s6920_s1 + $0x128] sm:$0xff]  }
 0xb69   :  { %v2726_v35 = vadd.f32 %v2722_v31, %v6188_v55  ;;  %v5884_v31 = vld [vmem:[%s6920_s1 + $0x130] sm:$0xff]   ;;  %v5886_v33 = vld [vmem:[%s6920_s1 + $0x120] sm:$0xff]   ;;  %v5887_v34 = vld [vmem:[%s6920_s1 + $0x118] sm:$0xff]  }
 0xb6a   :  { %v2674_v36 = vpop.f32.mrf.mxu1  ;;  %v2714_v37 = vpop.f32.mrf.mxu0 }
 0xb6b   :  { %v2723_v38 = vmul.f32 0.10206208, %v2714_v37  ;;  %v2734_v39 = vsel %vm485_vm4, %v2726_v35, -inf  ;;  %v5889_v36 = vld [vmem:[%s6920_s1 + $0x108] sm:$0xff]   ;;  %v5890_v37 = vld [vmem:[%s6920_s1 + $0x100] sm:$0xff]  }
 0xb6c   :  { %v5585_v40 = vpop.f32.mrf.mxu1  ;;  %2735 = vmax.xlane.f32.xlu1 %v2734_v39  ;;  %v5590_v41 = vpop.f32.mrf.mxu0  ;;  %v5892_v39 = vld [vmem:[%s6922_s3 + $0x138] sm:$0xff]  }
 0xb6d   :  { %v2727_v43 = vadd.f32 %v2723_v38, %v6188_v55  ;;  %v5891_v38 = vld [vmem:[%s6924_s5 + $0x18] sm:$0xff]  }
 0xb6e   :  { %v2717_v44 = vpop.f32.mrf.mxu0 }
 0xb6f   :  { %v2737_v45 = vsel %vm485_vm4, %v2727_v43, -inf }
 0xb70   :  { %2738 = vmax.xlane.f32.xlu0 %v2737_v45  ;;  %v5591_v46 = vpop.f32.mrf.mxu0 }
 0xbed   :  { %v2730_v27 = vpop.xlane.xlu1 %2729 }
 0xbee   :  { %v2740_v48 = vsub.f32 %v2724_v15, %v2730_v27  ;;  %v2872_v15 = vsel %vm537_vm2, %v4994_v12, 0 }
 0xbf0   :  { %v2744_v49 = vmul.f32 1.442695, %v2740_v48 }
 0xbf1   :  { %v2733_v50 = vpop.xlane.xlu0 %2732 }
 0xbf2   :  { %5966 = vpow2.f32 %v2744_v49  ;;  %v2741_v53 = vsub.f32 %v2725_v28, %v2733_v50 }
 0xbf4   :  { %v2746_v51 = vmul.f32 1.442695, %v2741_v53 }
 0xbf5   :  { %v2736_v52 = vpop.xlane.xlu1 %2735 }
 0xbf6   :  { %5968 = vpow2.f32 %v2746_v51  ;;  %v2742_v54 = vsub.f32 %v2726_v35, %v2736_v52  ;;  %v5888_v35 = vld [vmem:[%s6920_s1 + $0x110] sm:$0xff]  }
 0xbf8   :  { %v2748_v56 = vmul.f32 1.442695, %v2742_v54 }
 0xbf9   :  { %v2739_v42 = vpop.xlane.xlu0 %2738 }
 0xbfa   :  { %5970 = vpow2.f32 %v2748_v56  ;;  %v2743_v58 = vsub.f32 %v2727_v43, %v2739_v42  ;;  %v5893_v56 = vld [vmem:[%s6922_s3 + $0x130] sm:$0xff]  }
 0xbfc   :  { %v2750_v60 = vmul.f32 1.442695, %v2743_v58 }
 0xbfe   :  { %5972 = vpow2.f32 %v2750_v60 }
 0xbff   :  { %v5967_v2 = vpop.eup %5966 }
 0xc00   :  { %v2752_v3 = vsel %vm485_vm4, %v5967_v2, 0.0 }
 0xc01   :  { %2753 = vadd.xlane.f32.xlu1 %v2752_v3 }
 0xc03   :  { %v5969_v5 = vpop.eup %5968 }
 0xc04   :  { %v2755_v62 = vsel %vm485_vm4, %v5969_v5, 0.0 }
 0xc05   :  { %2756 = vadd.xlane.f32.xlu0 %v2755_v62  ;;  %v5896_v62 = vld [vmem:[%s6922_s3 + $0x118] sm:$0xff]  }
 0xc07   :  { %v5971_v17 = vpop.eup %5970 }
 0xc08   :  { %v2758_v7 = vsel %vm485_vm4, %v5971_v17, 0.0 }
 0xc09   :  { %2759 = vadd.xlane.f32.xlu1 %v2758_v7  ;;  %v5898_v7 = vld [vmem:[%s6922_s3 + $0x108] sm:$0xff]  }
 0xc0b   :  { %v5973_v63 = vpop.eup %5972 }
 0xc0c   :  { %v2761_v21 = vsel %vm485_vm4, %v5973_v63, 0.0 }
 0xc0d   :  { %2762 = vadd.xlane.f32.xlu0 %v2761_v21 }
 0xc8a   :  { %v2754_v8 = vpop.xlane.xlu1 %2753 }
 0xc8b   :  { %5974 = vrcp.f32 %v2754_v8  ;;  %v4834_v8 = vld [vmem:[%s6921_s2 + $0x4] ss:$0 sm:$0xff] }
 0xc8e   :  { %v2757_v10 = vpop.xlane.xlu0 %2756 }
 0xc8f   :  { %5976 = vrcp.f32 %v2757_v10 }
 0xc92   :  { %v2760_v1 = vpop.xlane.xlu1 %2759 }
 0xc93   :  { %5978 = vrcp.f32 %v2760_v1 }
 0xc96   :  { %v2763_v23 = vpop.xlane.xlu0 %2762 }
 0xc97   :  { %5980 = vrcp.f32 %v2763_v23 }
 0xc98   :  { %v5975_v11 = vpop.eup %5974 }
 0xc99   :  { %v2768_v13 = vmul.f32 %v5975_v11, %v5967_v2  ;;  %v5894_v2 = vld [vmem:[%s6922_s3 + $0x128] sm:$0xff]  }
 0xc9b   :  { %v2772_v59 = vpack.c.bf16 %v2768_v13, %v2768_v13 }
 0xc9c   :  { %v5977_v14 = vpop.eup %5976 }
 0xc9d   :  { %5595 = vmatmul.mubr.msk.bf16.vlgmr.msra.gmra.mxu1 %vm485_vm4, %v2772_v59  ;;  %v2769_v0 = vmul.f32 %v5977_v14, %v5969_v5  ;;  %v5895_v5 = vld [vmem:[%s6922_s3 + $0x120] sm:$0xff]  }
 0xc9e   :  { %5605 = vmatpush3.bf16.msra.mxu1 %v2872_v15  ;;  %5606 = vmatprep.mubr.msk.bf16.mxu1 %vm6037_vm0, %v6036_v22 }
 0xc9f   :  { %v2773_v24 = vpack.c.bf16 %v2769_v0, %v2769_v0  ;;  %5616 = vmatprep.subr.bf16.mxu1 %v5891_v38 }
 0xca0   :  { %v5979_v18 = vpop.eup %5978 }
 0xca1   :  { %5601 = vmatmul.mubr.msk.bf16.vlgmr.msra.gmra.mxu0 %vm485_vm4, %v2773_v24  ;;  %v2770_v26 = vmul.f32 %v5979_v18, %v5971_v17  ;;  %v5897_v17 = vld [vmem:[%s6922_s3 + $0x110] sm:$0xff]  }
 0xca2   :  { %5611 = vmatpush3.bf16.msra.mxu0 %v2918_v29  ;;  %5612 = vmatprep.mubr.msk.bf16.mxu0 %vm6037_vm0, %v6036_v22 }
 0xca3   :  { %v2774_v9 = vpack.c.bf16 %v2770_v26, %v2770_v26  ;;  %5622 = vmatprep.subr.bf16.mxu0 %v5883_v20 }
 0xca4   :  { %v5981_v28 = vpop.eup %5980 }
 0xca5   :  { %5607 = vmatmul.mubr.msk.bf16.vlgmr.msra.gmra.mxu1 %vm485_vm4, %v2774_v9  ;;  %v2771_v25 = vmul.f32 %v5981_v28, %v5973_v63  ;;  %v5899_v63 = vld [vmem:[%s6922_s3 + $0x100] sm:$0xff]  }
 0xca6   :  { %5617 = vmatpush3.bf16.msra.mxu1 %v5891_v38 }
 0xca7   :  { %v2775_v30 = vpack.c.bf16 %v2771_v25, %v2771_v25  ;;  %5642 = vmatprep.subr.bf16.mxu1 %v5892_v39 }
 0xca9   :  { %5613 = vmatmul.mubr.msk.bf16.vlgmr.msra.gmra.mxu0 %vm485_vm4, %v2775_v30 }
 0xcaa   :  { %5623 = vmatpush3.bf16.msra.mxu0 %v5883_v20  ;;  %5638 = vmatprep.mubr.bf16.mxu0 %v6100_v6 }
 0xcab   :  { %5624 = vmatprep.subr.bf16.mxu0 %v5884_v31 }
 0xcae   :  { %5625 = vmatpush3.bf16.msra.mxu0 %v5884_v31 }
 0xcaf   :  { %5626 = vmatprep.subr.bf16.mxu0 %v5885_v32 }
 0xcb2   :  { %5627 = vmatpush3.bf16.msra.mxu0 %v5885_v32 }
 0xcb3   :  { %5628 = vmatprep.subr.bf16.mxu0 %v5886_v33 }
 0xcb6   :  { %5629 = vmatpush3.bf16.msra.mxu0 %v5886_v33 }
 0xcb7   :  { %5630 = vmatprep.subr.bf16.mxu0 %v5887_v34 }
 0xcba   :  { %5631 = vmatpush3.bf16.msra.mxu0 %v5887_v34  ;;  %v4860_v34 = vld [vmem:[%s6923_s4 + $0x4] ss:$0 sm:$0xff] }
 0xcbb   :  { %5632 = vmatprep.subr.bf16.mxu0 %v5888_v35 }
 0xcbe   :  { %5633 = vmatpush3.bf16.msra.mxu0 %v5888_v35 }
 0xcbf   :  { %5634 = vmatprep.subr.bf16.mxu0 %v5889_v36 }
 0xcc2   :  { %5635 = vmatpush3.bf16.msra.mxu0 %v5889_v36 }
 0xcc3   :  { %5636 = vmatprep.subr.bf16.mxu0 %v5890_v37 }
 0xcc6   :  { %5637 = vmatpush3.bf16.msra.mxu0 %v5890_v37 }
 0xcc7   :  { %5662 = vmatprep.subr.bf16.mxu0 %v6036_v22 }
 0xcc9   :  { %5639 = vmatmul.mubr.bf16.vlgmr.msra.gmra.mxu0 %v6140_v19 }
 0xcca   :  { %5664 = vmatprep.mubr.msk.bf16.mxu0 %vm6037_vm0, %v6036_v22 }
 0xd5d   :  { %v2816_v40 = vpop.f32.mrf.mxu1 }
 0xd5f   :  { %v5596_v41 = vpop.f32.mrf.mxu1 }
 0xd61   :  { %v2819_v43 = vpop.f32.mrf.mxu1  ;;  %v2862_v44 = vpop.f32.mrf.mxu0 }
 0xd62   :  { %v2960_v45 = vpack.c.bf16 %v2862_v44, %v2816_v40 }
 0xd63   :  { %v5597_v46 = vpop.f32.mrf.mxu1  ;;  %v5602_v27 = vpop.f32.mrf.mxu0 }
 0xd64   :  { %5618 = vmatprep.mubr.msk.bf16.mxu1 %vm304_vm1, %v2960_v45 }
 0xd65   :  { %v2865_v48 = vpop.f32.mrf.mxu0  ;;  %v2908_v49 = vpop.f32.mrf.mxu1 }
 0xd67   :  { %v5603_v50 = vpop.f32.mrf.mxu0  ;;  %v5608_v53 = vpop.f32.mrf.mxu1 }
 0xd69   :  { %v2911_v51 = vpop.f32.mrf.mxu1  ;;  %v2954_v52 = vpop.f32.mrf.mxu0 }
 0xd6a   :  { %v2961_v54 = vpack.c.bf16 %v2954_v52, %v2908_v49 }
 0xd6b   :  { %v5609_v42 = vpop.f32.mrf.mxu1  ;;  %v5614_v58 = vpop.f32.mrf.mxu0 }
 0xd6c   :  { %5619 = vmatmul.mubr.msk.bf16.vlgmr.msra.gmra.mxu1 %vm304_vm1, %v2961_v54 }
 0xd6d   :  { %v2957_v60 = vpop.f32.mrf.mxu0  ;;  %5643 = vmatpush3.bf16.msra.mxu1 %v5892_v39  ;;  %5658 = vmatprep.mubr.bf16.mxu1 %v6100_v6 }
 0xd6e   :  { %5644 = vmatprep.subr.bf16.mxu1 %v5893_v56 }
 0xd6f   :  { %v5615_v3 = vpop.f32.mrf.mxu0 }
 0xd71   :  { %5645 = vmatpush3.bf16.msra.mxu1 %v5893_v56 }
 0xd72   :  { %5646 = vmatprep.subr.bf16.mxu1 %v5894_v2 }
 0xd75   :  { %5647 = vmatpush3.bf16.msra.mxu1 %v5894_v2 }
 0xd76   :  { %5648 = vmatprep.subr.bf16.mxu1 %v5895_v5 }
 0xd79   :  { %5649 = vmatpush3.bf16.msra.mxu1 %v5895_v5 }
 0xd7a   :  { %5650 = vmatprep.subr.bf16.mxu1 %v5896_v62 }
 0xd7d   :  { %5651 = vmatpush3.bf16.msra.mxu1 %v5896_v62 }
 0xd7e   :  { %5652 = vmatprep.subr.bf16.mxu1 %v5897_v17 }
 0xd81   :  { %5653 = vmatpush3.bf16.msra.mxu1 %v5897_v17 }
 0xd82   :  { %5654 = vmatprep.subr.bf16.mxu1 %v5898_v7 }
 0xd85   :  { %5655 = vmatpush3.bf16.msra.mxu1 %v5898_v7 }
 0xd86   :  { %5656 = vmatprep.subr.bf16.mxu1 %v5899_v63 }
 0xd89   :  { %v5640_v21 = vpop.f32.mrf.mxu0  ;;  %5657 = vmatpush3.bf16.msra.mxu1 %v5899_v63 }
 0xd8a   :  { %5668 = vmatprep.subr.bf16.mxu1 %v6036_v22  ;;  %v3146_v13 = vadd.f32 %v5640_v21, %v4834_v8 }
 0xd8b   :  { %v3137_v10 = vpop.f32.mrf.mxu0 }
 0xd8c   :  { %v3138_v1 = vadd.f32 %v4834_v8, %v3137_v10  ;;  %5659 = vmatmul.mubr.bf16.vlgmr.msra.gmra.mxu1 %v6140_v19  ;;  %v4998_v16 = vpack.c.bf16 %v3146_v13, %v3146_v13 }
 0xd8d   :  { %v5641_v23 = vpop.f32.mrf.mxu0  ;;  %5670 = vmatprep.mubr.msk.bf16.mxu1 %vm6037_vm0, %v6036_v22 }
 0xd8e   :  { %v4996_v11 = vpack.c.bf16 %v3138_v1, %v3138_v1  ;;  %v3149_v0 = vadd.f32 %v5641_v23, %v4834_v8  ;;  %v3385_v20 = vsel %vm304_vm1, %v4998_v16, 0 }
 0xd8f   :  { %v3140_v12 = vpop.f32.mrf.mxu0 }
 0xd90   :  { %v3299_v59 = vsel %vm304_vm1, %v4996_v11, 0  ;;  %v3141_v14 = vadd.f32 %v4834_v8, %v3140_v12  ;;  %v4999_v18 = vpack.c.bf16 %v3149_v0, %v3149_v0 }
 0xd91   :  { %5663 = vmatpush3.bf16.xpose.msra.mxu0 %v3299_v59 }
 0xd92   :  { %v4997_v15 = vpack.c.bf16 %v3141_v14, %v3141_v14  ;;  %5674 = vmatprep.subr.bf16.mxu0 %v6036_v22  ;;  %v3428_v29 = vsel %vm304_vm1, %v4999_v18, 0 }
 0xd94   :  { %v3342_v24 = vsel %vm304_vm1, %v4997_v15, 0 }
 0xd95   :  { %5669 = vmatpush3.bf16.xpose.msra.mxu1 %v3342_v24 }
 0xd96   :  { %5680 = vmatprep.subr.bf16.mxu1 %v6036_v22 }
 0xd98   :  { %5665 = vmatmul.mubr.msk.bf16.vlgmr.msra.gmra.mxu0 %vm304_vm1, %v4996_v11 }
 0xd99   :  { %5675 = vmatpush3.bf16.xpose.msra.mxu0 %v3385_v20  ;;  %5676 = vmatprep.mubr.msk.bf16.mxu0 %vm6037_vm0, %v6036_v22 }
 0xd9a   :  { %5686 = vmatprep.subr.bf16.mxu0 %v6036_v22 }
 0xd9c   :  { %5671 = vmatmul.mubr.msk.bf16.vlgmr.msra.gmra.mxu1 %vm304_vm1, %v4997_v15 }
 0xd9d   :  { %5681 = vmatpush3.bf16.xpose.msra.mxu1 %v3428_v29  ;;  %5682 = vmatprep.mubr.msk.bf16.mxu1 %vm6037_vm0, %v6036_v22 }
 0xd9e   :  { %5692 = vmatprep.subr.bf16.mxu1 %v6036_v22 }
 0xda0   :  { %5677 = vmatmul.mubr.msk.bf16.vlgmr.msra.gmra.mxu0 %vm304_vm1, %v4998_v16 }
 0xda1   :  { %5688 = vmatprep.mubr.msk.bf16.mxu0 %vm6037_vm0, %v6036_v22 }
 0xda4   :  { %5683 = vmatmul.mubr.msk.bf16.vlgmr.msra.gmra.mxu1 %vm304_vm1, %v4999_v18 }
 0xda5   :  { %5694 = vmatprep.mubr.msk.bf16.mxu1 %vm6037_vm0, %v6036_v22 }
 0xe2c   :  { %v5620_v26 = vpop.f32.mrf.mxu1 }
 0xe2d   :  { %v6721_v9 = vadd.f32 %v5620_v26, %v6585_v57 }
 0xe2e   :  { %v3011_v28 = vpop.f32.mrf.mxu1 }
 0xe2f   :  { %v6724_v25 = vadd.f32 %v3011_v28, %v6589_v47 }
 0xe30   :  { %v5621_v30 = vpop.f32.mrf.mxu1 }
 0xe31   :  { %v6727_v31 = vadd.f32 %v5621_v30, %v6593_v4 }
 0xe32   :  { %v3014_v32 = vpop.f32.mrf.mxu1 }
 0xe33   :  { %v6730_v33 = vadd.f32 %v3014_v32, %v6595_v61 }
 0xe4c   :  { %v5660_v35 = vpop.f32.mrf.mxu1 }
 0xe4d   :  { %v6735_v36 = vadd.f32 %v5660_v35, %v4860_v34 }
 0xe4e   :  { %v3259_v57 = vpop.f32.mrf.mxu1 }
 0xe4f   :  { %v3260_v37 = vadd.f32 %v4860_v34, %v3259_v57 }
 0xe50   :  { %v5661_v38 = vpop.f32.mrf.mxu1 }
 0xe51   :  { %v5000_v47 = vpack.c.bf16 %v3260_v37, %v3260_v37  ;;  %v6737_v39 = vadd.f32 %v5661_v38, %v4860_v34 }
 0xe52   :  { %v3262_v40 = vpop.f32.mrf.mxu1 }
 0xe53   :  { %v3530_v4 = vsel %vm537_vm2, %v5000_v47, 0  ;;  %v3263_v41 = vadd.f32 %v4860_v34, %v3262_v40 }
 0xe54   :  { %5687 = vmatpush3.bf16.msra.mxu0 %v3530_v4 }
 0xe55   :  { %v5001_v61 = vpack.c.bf16 %v3263_v41, %v3263_v41  ;;  %5698 = vmatprep.subr.bf16.mxu0 %v6036_v22 }
 0xe57   :  { %v3576_v43 = vsel %vm537_vm2, %v5001_v61, 0 }
 0xe58   :  { %v3335_v44 = vpop.f32.mrf.mxu0  ;;  %5693 = vmatpush3.bf16.msra.mxu1 %v3576_v43  ;;  %v5002_v43 = vpack.c.bf16 %v6735_v36, %v6735_v36  ;;  %v5900_v36 = vld [vmem:[%s6920_s1 + $0x178] sm:$0xff]  }
 0xe59   :  { %v3470_v45 = vmul.f32 0.10206208, %v3335_v44  ;;  %5704 = vmatprep.subr.bf16.mxu1 %v6036_v22 }
 0xe5a   :  { %v5666_v46 = vpop.f32.mrf.mxu0 }
 0xe5b   :  { %v3474_v27 = vadd.f32 %v3470_v45, %v6188_v55 }
 0xe5c   :  { %v3338_v48 = vpop.f32.mrf.mxu0  ;;  %v3378_v49 = vpop.f32.mrf.mxu1 }
 0xe5d   :  { %v3471_v50 = vmul.f32 0.10206208, %v3378_v49  ;;  %v3478_v53 = vsel %vm485_vm4, %v3474_v27, -inf  ;;  %v5003_v48 = vpack.c.bf16 %v6737_v39, %v6737_v39 }
 0xe5e   :  { %3479 = vmax.xlane.f32.xlu1 %v3478_v53  ;;  %v5667_v51 = vpop.f32.mrf.mxu0  ;;  %v5672_v52 = vpop.f32.mrf.mxu1 }
 0xe5f   :  { %v3475_v54 = vadd.f32 %v3471_v50, %v6188_v55  ;;  %v3668_v51 = vsel %vm537_vm2, %v5003_v48, 0 }
 0xe60   :  { %v3381_v56 = vpop.f32.mrf.mxu1  ;;  %v3421_v42 = vpop.f32.mrf.mxu0 }
 0xe61   :  { %v3472_v58 = vmul.f32 0.10206208, %v3421_v42  ;;  %v3481_v60 = vsel %vm485_vm4, %v3475_v54, -inf }
 0xe62   :  { %v5678_v2 = vpop.f32.mrf.mxu0  ;;  %3482 = vmax.xlane.f32.xlu0 %v3481_v60  ;;  %v5673_v3 = vpop.f32.mrf.mxu1  ;;  %v5902_v60 = vld [vmem:[%s6920_s1 + $0x168] sm:$0xff]  }
 0xe63   :  { %v3476_v5 = vadd.f32 %v3472_v58, %v6188_v55  ;;  %v5901_v58 = vld [vmem:[%s6920_s1 + $0x170] sm:$0xff]   ;;  %v5903_v2 = vld [vmem:[%s6920_s1 + $0x160] sm:$0xff]   ;;  %v5904_v3 = vld [vmem:[%s6920_s1 + $0x158] sm:$0xff]  }
 0xe64   :  { %v3424_v62 = vpop.f32.mrf.mxu0  ;;  %v3464_v17 = vpop.f32.mrf.mxu1 }
 0xe65   :  { %v3473_v7 = vmul.f32 0.10206208, %v3464_v17  ;;  %v3484_v63 = vsel %vm485_vm4, %v3476_v5, -inf  ;;  %v5906_v62 = vld [vmem:[%s6920_s1 + $0x148] sm:$0xff]   ;;  %v5907_v17 = vld [vmem:[%s6920_s1 + $0x140] sm:$0xff]  }
 0xe66   :  { %3485 = vmax.xlane.f32.xlu1 %v3484_v63  ;;  %v5679_v21 = vpop.f32.mrf.mxu0  ;;  %v5684_v8 = vpop.f32.mrf.mxu1  ;;  %v5909_v63 = vld [vmem:[%s6922_s3 + $0x178] sm:$0xff]  }
 0xe67   :  { %v3477_v10 = vadd.f32 %v3473_v7, %v6188_v55  ;;  %v5908_v7 = vld [vmem:[%s6924_s5 + $0x20] sm:$0xff]  }
 0xe68   :  { %v3467_v1 = vpop.f32.mrf.mxu1 }
 0xe69   :  { %v3487_v23 = vsel %vm485_vm4, %v3477_v10, -inf }
 0xe6a   :  { %3488 = vmax.xlane.f32.xlu0 %v3487_v23  ;;  %v5685_v11 = vpop.f32.mrf.mxu1 }
 0xee7   :  { %v3480_v12 = vpop.xlane.xlu1 %3479 }
 0xee8   :  { %v3490_v13 = vsub.f32 %v3474_v27, %v3480_v12  ;;  %v3622_v27 = vsel %vm537_vm2, %v5002_v43, 0 }
 0xeea   :  { %v3494_v59 = vmul.f32 1.442695, %v3490_v13 }
 0xeeb   :  { %v3483_v14 = vpop.xlane.xlu0 %3482 }
 0xeec   :  { %5982 = vpow2.f32 %v3494_v59  ;;  %v3491_v15 = vsub.f32 %v3475_v54, %v3483_v14 }
 0xeee   :  { %v3496_v16 = vmul.f32 1.442695, %v3491_v15 }
 0xeef   :  { %v3486_v0 = vpop.xlane.xlu1 %3485 }
 0xef0   :  { %5984 = vpow2.f32 %v3496_v16  ;;  %v3492_v24 = vsub.f32 %v3476_v5, %v3486_v0  ;;  %v5905_v5 = vld [vmem:[%s6920_s1 + $0x150] sm:$0xff]  }
 0xef2   :  { %v3498_v20 = vmul.f32 1.442695, %v3492_v24 }
 0xef3   :  { %v3489_v18 = vpop.xlane.xlu0 %3488 }
 0xef4   :  { %5986 = vpow2.f32 %v3498_v20  ;;  %v3493_v29 = vsub.f32 %v3477_v10, %v3489_v18  ;;  %v5910_v20 = vld [vmem:[%s6922_s3 + $0x170] sm:$0xff]  }
 0xef6   :  { %v3500_v26 = vmul.f32 1.442695, %v3493_v29 }
 0xef8   :  { %5988 = vpow2.f32 %v3500_v26 }
 0xef9   :  { %v5983_v28 = vpop.eup %5982 }
 0xefa   :  { %v3502_v30 = vsel %vm485_vm4, %v5983_v28, 0.0 }
 0xefb   :  { %3503 = vadd.xlane.f32.xlu1 %v3502_v30 }
 0xefd   :  { %v5985_v32 = vpop.eup %5984 }
 0xefe   :  { %v3505_v34 = vsel %vm485_vm4, %v5985_v32, 0.0 }
 0xeff   :  { %3506 = vadd.xlane.f32.xlu0 %v3505_v34  ;;  %v5913_v34 = vld [vmem:[%s6922_s3 + $0x158] sm:$0xff]  }
 0xf01   :  { %v5987_v35 = vpop.eup %5986 }
 0xf02   :  { %v3508_v57 = vsel %vm485_vm4, %v5987_v35, 0.0 }
 0xf03   :  { %3509 = vadd.xlane.f32.xlu1 %v3508_v57  ;;  %v5916_v57 = vld [vmem:[%s6922_s3 + $0x140] sm:$0xff]  }
 0xf05   :  { %v5989_v37 = vpop.eup %5988 }
 0xf06   :  { %v3511_v38 = vsel %vm485_vm4, %v5989_v37, 0.0 }
 0xf07   :  { %3512 = vadd.xlane.f32.xlu0 %v3511_v38  ;;  %v4907_v38 = vld [vmem:[%s6921_s2 + $0x5] ss:$0 sm:$0xff] }
 0xf84   :  { %v3504_v47 = vpop.xlane.xlu1 %3503 }
 0xf85   :  { %5990 = vrcp.f32 %v3504_v47 }
 0xf88   :  { %v3507_v40 = vpop.xlane.xlu0 %3506 }
 0xf89   :  { %5992 = vrcp.f32 %v3507_v40 }
 0xf8c   :  { %v3510_v4 = vpop.xlane.xlu1 %3509 }
 0xf8d   :  { %5994 = vrcp.f32 %v3510_v4 }
 0xf90   :  { %v3513_v41 = vpop.xlane.xlu0 %3512 }
 0xf91   :  { %5996 = vrcp.f32 %v3513_v41 }
 0xf92   :  { %v5991_v61 = vpop.eup %5990 }
 0xf93   :  { %v3518_v44 = vmul.f32 %v5991_v61, %v5983_v28  ;;  %v5911_v28 = vld [vmem:[%s6922_s3 + $0x168] sm:$0xff]  }
 0xf95   :  { %v3522_v45 = vpack.c.bf16 %v3518_v44, %v3518_v44 }
 0xf96   :  { %v5993_v46 = vpop.eup %5992 }
 0xf97   :  { %5689 = vmatmul.mubr.msk.bf16.vlgmr.msra.gmra.mxu0 %vm485_vm4, %v3522_v45  ;;  %v3519_v49 = vmul.f32 %v5993_v46, %v5985_v32  ;;  %v5912_v32 = vld [vmem:[%s6922_s3 + $0x160] sm:$0xff]  }
 0xf98   :  { %5699 = vmatpush3.bf16.msra.mxu0 %v3622_v27  ;;  %5700 = vmatprep.mubr.msk.bf16.mxu0 %vm6037_vm0, %v6036_v22 }
 0xf99   :  { %v3523_v50 = vpack.c.bf16 %v3519_v49, %v3519_v49  ;;  %5710 = vmatprep.subr.bf16.mxu0 %v5908_v7 }
 0xf9a   :  { %v5995_v53 = vpop.eup %5994 }
 0xf9b   :  { %5695 = vmatmul.mubr.msk.bf16.vlgmr.msra.gmra.mxu1 %vm485_vm4, %v3523_v50  ;;  %v3520_v52 = vmul.f32 %v5995_v53, %v5987_v35  ;;  %v5915_v35 = vld [vmem:[%s6922_s3 + $0x148] sm:$0xff]  }
 0xf9c   :  { %5705 = vmatpush3.bf16.msra.mxu1 %v3668_v51  ;;  %5706 = vmatprep.mubr.msk.bf16.mxu1 %vm6037_vm0, %v6036_v22 }
 0xf9d   :  { %v3524_v39 = vpack.c.bf16 %v3520_v52, %v3520_v52  ;;  %5716 = vmatprep.subr.bf16.mxu1 %v5900_v36 }
 0xf9e   :  { %v5997_v54 = vpop.eup %5996 }
 0xf9f   :  { %5701 = vmatmul.mubr.msk.bf16.vlgmr.msra.gmra.mxu0 %vm485_vm4, %v3524_v39  ;;  %v3521_v56 = vmul.f32 %v5997_v54, %v5989_v37 }
 0xfa0   :  { %5711 = vmatpush3.bf16.msra.mxu0 %v5908_v7 }
 0xfa1   :  { %v3525_v42 = vpack.c.bf16 %v3521_v56, %v3521_v56  ;;  %5736 = vmatprep.subr.bf16.mxu0 %v5909_v63 }
 0xfa3   :  { %5707 = vmatmul.mubr.msk.bf16.vlgmr.msra.gmra.mxu1 %vm485_vm4, %v3525_v42 }
 0xfa4   :  { %5717 = vmatpush3.bf16.msra.mxu1 %v5900_v36  ;;  %5732 = vmatprep.mubr.bf16.mxu1 %v6100_v6 }
 0xfa5   :  { %5718 = vmatprep.subr.bf16.mxu1 %v5901_v58 }
 0xfa8   :  { %5719 = vmatpush3.bf16.msra.mxu1 %v5901_v58 }
 0xfa9   :  { %5720 = vmatprep.subr.bf16.mxu1 %v5902_v60 }
 0xfac   :  { %5721 = vmatpush3.bf16.msra.mxu1 %v5902_v60  ;;  %v4933_v60 = vld [vmem:[%s6923_s4 + $0x5] ss:$0 sm:$0xff] }
 0xfad   :  { %5722 = vmatprep.subr.bf16.mxu1 %v5903_v2 }
 0xfb0   :  { %5723 = vmatpush3.bf16.msra.mxu1 %v5903_v2 }
 0xfb1   :  { %5724 = vmatprep.subr.bf16.mxu1 %v5904_v3 }
 0xfb4   :  { %5725 = vmatpush3.bf16.msra.mxu1 %v5904_v3 }
 0xfb5   :  { %5726 = vmatprep.subr.bf16.mxu1 %v5905_v5 }
 0xfb8   :  { %5727 = vmatpush3.bf16.msra.mxu1 %v5905_v5 }
 0xfb9   :  { %5728 = vmatprep.subr.bf16.mxu1 %v5906_v62 }
 0xfbc   :  { %5729 = vmatpush3.bf16.msra.mxu1 %v5906_v62 }
 0xfbd   :  { %5730 = vmatprep.subr.bf16.mxu1 %v5907_v17 }
 0xfc0   :  { %5731 = vmatpush3.bf16.msra.mxu1 %v5907_v17 }
 0xfc1   :  { %5756 = vmatprep.subr.bf16.mxu1 %v6036_v22 }
 0xfc3   :  { %5733 = vmatmul.mubr.bf16.vlgmr.msra.gmra.mxu1 %v6140_v19 }
 0xfc4   :  { %5758 = vmatprep.mubr.msk.bf16.mxu1 %vm6037_vm0, %v6036_v22 }
0x1057   :  { %v3566_v21 = vpop.f32.mrf.mxu0 }
0x1059   :  { %v5690_v8 = vpop.f32.mrf.mxu0 }
0x105b   :  { %v3569_v10 = vpop.f32.mrf.mxu0  ;;  %v3612_v1 = vpop.f32.mrf.mxu1 }
0x105c   :  { %v3710_v23 = vpack.c.bf16 %v3612_v1, %v3566_v21 }
0x105d   :  { %v5691_v11 = vpop.f32.mrf.mxu0  ;;  %v5696_v12 = vpop.f32.mrf.mxu1 }
0x105e   :  { %5712 = vmatprep.mubr.msk.bf16.mxu0 %vm304_vm1, %v3710_v23 }
0x105f   :  { %v3615_v13 = vpop.f32.mrf.mxu1  ;;  %v3658_v59 = vpop.f32.mrf.mxu0 }
0x1061   :  { %v5697_v14 = vpop.f32.mrf.mxu1  ;;  %v5702_v15 = vpop.f32.mrf.mxu0 }
0x1063   :  { %v3661_v16 = vpop.f32.mrf.mxu0  ;;  %v3704_v0 = vpop.f32.mrf.mxu1 }
0x1064   :  { %v3711_v24 = vpack.c.bf16 %v3704_v0, %v3658_v59 }
0x1065   :  { %v5703_v18 = vpop.f32.mrf.mxu0  ;;  %v5708_v29 = vpop.f32.mrf.mxu1 }
0x1066   :  { %5713 = vmatmul.mubr.msk.bf16.vlgmr.msra.gmra.mxu0 %vm304_vm1, %v3711_v24 }
0x1067   :  { %v3707_v26 = vpop.f32.mrf.mxu1  ;;  %5737 = vmatpush3.bf16.msra.mxu0 %v5909_v63  ;;  %5752 = vmatprep.mubr.bf16.mxu0 %v6100_v6  ;;  %v5914_v6 = vld [vmem:[%s6922_s3 + $0x150] sm:$0xff]  }
0x1068   :  { %5738 = vmatprep.subr.bf16.mxu0 %v5910_v20 }
0x1069   :  { %v5709_v30 = vpop.f32.mrf.mxu1 }
0x106b   :  { %5739 = vmatpush3.bf16.msra.mxu0 %v5910_v20 }
0x106c   :  { %5740 = vmatprep.subr.bf16.mxu0 %v5911_v28 }
0x106f   :  { %5741 = vmatpush3.bf16.msra.mxu0 %v5911_v28 }
0x1070   :  { %5742 = vmatprep.subr.bf16.mxu0 %v5912_v32 }
0x1073   :  { %5743 = vmatpush3.bf16.msra.mxu0 %v5912_v32 }
0x1074   :  { %5744 = vmatprep.subr.bf16.mxu0 %v5913_v34 }
0x1077   :  { %5745 = vmatpush3.bf16.msra.mxu0 %v5913_v34 }
0x1078   :  { %5746 = vmatprep.subr.bf16.mxu0 %v5914_v6 }
0x107b   :  { %5747 = vmatpush3.bf16.msra.mxu0 %v5914_v6 }
0x107c   :  { %5748 = vmatprep.subr.bf16.mxu0 %v5915_v35 }
0x107f   :  { %5749 = vmatpush3.bf16.msra.mxu0 %v5915_v35 }
0x1080   :  { %5750 = vmatprep.subr.bf16.mxu0 %v5916_v57 }
0x1083   :  { %v5734_v37 = vpop.f32.mrf.mxu1  ;;  %5751 = vmatpush3.bf16.msra.mxu0 %v5916_v57 }
0x1084   :  { %5762 = vmatprep.subr.bf16.mxu0 %v6036_v22  ;;  %v3896_v43 = vadd.f32 %v5734_v37, %v4907_v38 }
0x1085   :  { %v3887_v47 = vpop.f32.mrf.mxu1 }
0x1086   :  { %v3888_v40 = vadd.f32 %v4907_v38, %v3887_v47  ;;  %5753 = vmatmul.mubr.bf16.vlgmr.msra.gmra.mxu0 %v6140_v19  ;;  %v5006_v27 = vpack.c.bf16 %v3896_v43, %v3896_v43 }
0x1087   :  { %v5735_v4 = vpop.f32.mrf.mxu1  ;;  %5764 = vmatprep.mubr.msk.bf16.mxu0 %vm6037_vm0, %v6036_v22 }
0x1088   :  { %v5004_v41 = vpack.c.bf16 %v3888_v40, %v3888_v40  ;;  %v3899_v48 = vadd.f32 %v5735_v4, %v4907_v38  ;;  %v4135_v19 = vsel %vm304_vm1, %v5006_v27, 0 }
0x1089   :  { %v3890_v61 = vpop.f32.mrf.mxu1 }
0x108a   :  { %v4049_v44 = vsel %vm304_vm1, %v5004_v41, 0  ;;  %v3891_v45 = vadd.f32 %v4907_v38, %v3890_v61  ;;  %v5007_v50 = vpack.c.bf16 %v3899_v48, %v3899_v48 }
0x108b   :  { %5757 = vmatpush3.bf16.xpose.msra.mxu1 %v4049_v44 }
0x108c   :  { %v5005_v46 = vpack.c.bf16 %v3891_v45, %v3891_v45  ;;  %5768 = vmatprep.subr.bf16.mxu1 %v6036_v22  ;;  %v4178_v36 = vsel %vm304_vm1, %v5007_v50, 0 }
0x108e   :  { %v4092_v49 = vsel %vm304_vm1, %v5005_v46, 0 }
0x108f   :  { %5763 = vmatpush3.bf16.xpose.msra.mxu0 %v4092_v49 }
0x1090   :  { %5774 = vmatprep.subr.bf16.mxu0 %v6036_v22 }
0x1092   :  { %5759 = vmatmul.mubr.msk.bf16.vlgmr.msra.gmra.mxu1 %vm304_vm1, %v5004_v41 }
0x1093   :  { %5769 = vmatpush3.bf16.xpose.msra.mxu1 %v4135_v19  ;;  %5770 = vmatprep.mubr.msk.bf16.mxu1 %vm6037_vm0, %v6036_v22 }
0x1094   :  { %5780 = vmatprep.subr.bf16.mxu1 %v6036_v22 }
0x1096   :  { %5765 = vmatmul.mubr.msk.bf16.vlgmr.msra.gmra.mxu0 %vm304_vm1, %v5005_v46 }
0x1097   :  { %5775 = vmatpush3.bf16.xpose.msra.mxu0 %v4178_v36  ;;  %5776 = vmatprep.mubr.msk.bf16.mxu0 %vm6037_vm0, %v6036_v22 }
0x1098   :  { %5786 = vmatprep.subr.bf16.mxu0 %v6036_v22 }
0x109a   :  { %5771 = vmatmul.mubr.msk.bf16.vlgmr.msra.gmra.mxu1 %vm304_vm1, %v5006_v27 }
0x109b   :  { %5782 = vmatprep.mubr.msk.bf16.mxu1 %vm6037_vm0, %v6036_v22 }
0x109e   :  { %5777 = vmatmul.mubr.msk.bf16.vlgmr.msra.gmra.mxu0 %vm304_vm1, %v5007_v50 }
0x109f   :  { %5788 = vmatprep.mubr.msk.bf16.mxu0 %vm6037_vm0, %v6036_v22 }
0x1126   :  { %v5714_v53 = vpop.f32.mrf.mxu0 }
0x1127   :  { %v6856_v51 = vadd.f32 %v5714_v53, %v6721_v9 }
0x1128   :  { %v3761_v52 = vpop.f32.mrf.mxu0 }
0x1129   :  { %v6859_v39 = vadd.f32 %v3761_v52, %v6724_v25 }
0x112a   :  { %v5715_v54 = vpop.f32.mrf.mxu0 }
0x112b   :  { %v6862_v56 = vadd.f32 %v5715_v54, %v6727_v31 }
0x112c   :  { %v3764_v42 = vpop.f32.mrf.mxu0 }
0x112d   :  { %v6865_v58 = vadd.f32 %v3764_v42, %v6730_v33 }
0x1146   :  { %v5754_v2 = vpop.f32.mrf.mxu0 }
0x1147   :  { %v6870_v3 = vadd.f32 %v5754_v2, %v4933_v60 }
0x1148   :  { %v4009_v9 = vpop.f32.mrf.mxu0 }
0x1149   :  { %v4010_v5 = vadd.f32 %v4933_v60, %v4009_v9 }
0x114a   :  { %v5755_v62 = vpop.f32.mrf.mxu0 }
0x114b   :  { %v5008_v25 = vpack.c.bf16 %v4010_v5, %v4010_v5  ;;  %v6872_v17 = vadd.f32 %v5755_v62, %v4933_v60 }
0x114c   :  { %v4012_v7 = vpop.f32.mrf.mxu0 }
0x114d   :  { %v4280_v31 = vsel %vm537_vm2, %v5008_v25, 0  ;;  %v4013_v63 = vadd.f32 %v4933_v60, %v4012_v7 }
0x114e   :  { %5781 = vmatpush3.bf16.msra.mxu1 %v4280_v31  ;;  %v5010_v31 = vpack.c.bf16 %v6870_v3, %v6870_v3 }
0x114f   :  { %v5009_v33 = vpack.c.bf16 %v4013_v63, %v4013_v63  ;;  %5792 = vmatprep.subr.bf16.mxu1 %v6036_v22 }
0x1151   :  { %v4326_v21 = vsel %vm537_vm2, %v5009_v33, 0 }
0x1152   :  { %v4085_v8 = vpop.f32.mrf.mxu1  ;;  %5787 = vmatpush3.bf16.msra.mxu0 %v4326_v21 }
0x1153   :  { %v4220_v10 = vmul.f32 0.10206208, %v4085_v8  ;;  %5798 = vmatprep.subr.bf16.mxu0 %v6036_v22  ;;  %v4372_v8 = vsel %vm537_vm2, %v5010_v31, 0 }
0x1154   :  { %v5760_v1 = vpop.f32.mrf.mxu1 }
0x1155   :  { %v4224_v23 = vadd.f32 %v4220_v10, %v6188_v55  ;;  %v5011_v10 = vpack.c.bf16 %v6872_v17, %v6872_v17 }
0x1156   :  { %v4088_v11 = vpop.f32.mrf.mxu1  ;;  %v4128_v12 = vpop.f32.mrf.mxu0 }
0x1157   :  { %v4221_v13 = vmul.f32 0.10206208, %v4128_v12  ;;  %v4228_v59 = vsel %vm485_vm4, %v4224_v23, -inf  ;;  %v4418_v12 = vsel %vm537_vm2, %v5011_v10, 0 }
0x1158   :  { %4229 = vmax.xlane.f32.xlu0 %v4228_v59  ;;  %v5761_v14 = vpop.f32.mrf.mxu1  ;;  %v5766_v15 = vpop.f32.mrf.mxu0 }
0x1159   :  { %v4225_v16 = vadd.f32 %v4221_v13, %v6188_v55  ;;  %v5917_v15 = vld [vmem:[%s6924_s5 + $0x28] sm:$0xff]  }
0x115a   :  { %v4131_v0 = vpop.f32.mrf.mxu0  ;;  %v4171_v24 = vpop.f32.mrf.mxu1 }
0x115b   :  { %v4222_v20 = vmul.f32 0.10206208, %v4171_v24  ;;  %v4231_v18 = vsel %vm485_vm4, %v4225_v16, -inf }
0x115c   :  { %v5772_v29 = vpop.f32.mrf.mxu1  ;;  %4232 = vmax.xlane.f32.xlu1 %v4231_v18  ;;  %v5767_v26 = vpop.f32.mrf.mxu0 }
0x115d   :  { %v4226_v28 = vadd.f32 %v4222_v20, %v6188_v55 }
0x115e   :  { %v4174_v30 = vpop.f32.mrf.mxu1  ;;  %v4214_v32 = vpop.f32.mrf.mxu0 }
0x115f   :  { %v4223_v34 = vmul.f32 0.10206208, %v4214_v32  ;;  %v4234_v6 = vsel %vm485_vm4, %v4226_v28, -inf }
0x1160   :  { %4235 = vmax.xlane.f32.xlu0 %v4234_v6  ;;  %v5773_v35 = vpop.f32.mrf.mxu1  ;;  %v5778_v57 = vpop.f32.mrf.mxu0 }
0x1161   :  { %v4227_v37 = vadd.f32 %v4223_v34, %v6188_v55 }
0x1162   :  { %v4217_v38 = vpop.f32.mrf.mxu0 }
0x1163   :  { %v4237_v47 = vsel %vm485_vm4, %v4227_v37, -inf }
0x1164   :  { %4238 = vmax.xlane.f32.xlu1 %v4237_v47  ;;  %v5779_v40 = vpop.f32.mrf.mxu0 }
0x11e1   :  { %v4230_v4 = vpop.xlane.xlu0 %4229 }
0x11e2   :  { %v4240_v41 = vsub.f32 %v4224_v23, %v4230_v4  ;;  %v4963_v4 = vld [vmem:[%s6925_s6] ss:$0 sm:$0xff]  ;;  %s6014_s6 = scalar_lea.vmem %s4551_s19, 512 }
0x11e3   :  { %p6015_p0 = scmp.ne.s32.totalorder %s4551_s19, %s6014_s6  ;;  %p6020_p2 = scmp.lt.s32.totalorder %s6014_s6, %s6014_s6 }
0x11e4   :  { %v4244_v61 = vmul.f32 1.442695, %v4240_v41 }
0x11e5   :  { %v4233_v43 = vpop.xlane.xlu1 %4232  ;;  %p6021_p3 = por %p6020_p2, %p6019_p1 }
0x11e6   :  { %5998 = vpow2.f32 %v4244_v61  ;;  %v4241_v44 = vsub.f32 %v4225_v16, %v4233_v43 }
0x11e7   :  { %p6022_p4 = pnand %p6021_p3, %p6015_p0 }
0x11e8   :  { %v4246_v45 = vmul.f32 1.442695, %v4241_v44 }
0x11e9   :  { %v4236_v46 = vpop.xlane.xlu0 %4235 }
0x11ea   :  { %6000 = vpow2.f32 %v4246_v45  ;;  %v4242_v27 = vsub.f32 %v4226_v28, %v4236_v46 }
0x11ec   :  { %v4248_v48 = vmul.f32 1.442695, %v4242_v27 }
0x11ed   :  { %v4239_v49 = vpop.xlane.xlu1 %4238 }
0x11ee   :  { %6002 = vpow2.f32 %v4248_v48  ;;  %v4243_v19 = vsub.f32 %v4227_v37, %v4239_v49 }
0x11f0   :  { %v4250_v55 = vmul.f32 1.442695, %v4243_v19 }
0x11f2   :  { %6004 = vpow2.f32 %v4250_v55 }
0x11f3   :  { %v5999_v50 = vpop.eup %5998 }
0x11f4   :  { %v4252_v36 = vsel %vm485_vm4, %v5999_v50, 0.0 }
0x11f5   :  { %4253 = vadd.xlane.f32.xlu0 %v4252_v36 }
0x11f7   :  { %v6001_v53 = vpop.eup %6000 }
0x11f8   :  { %v4255_v52 = vsel %vm485_vm4, %v6001_v53, 0.0 }
0x11f9   :  { %4256 = vadd.xlane.f32.xlu1 %v4255_v52 }
0x11fb   :  { %v6003_v54 = vpop.eup %6002 }
0x11fc   :  { %v4258_v42 = vsel %vm485_vm4, %v6003_v54, 0.0 }
0x11fd   :  { %4259 = vadd.xlane.f32.xlu0 %v4258_v42 }
0x11ff   :  { %v6005_v60 = vpop.eup %6004 }
0x1200   :  { %v4261_v2 = vsel %vm485_vm4, %v6005_v60, 0.0 }
0x1201   :  { %4262 = vadd.xlane.f32.xlu1 %v4261_v2 }
0x127e   :  { %v4254_v9 = vpop.xlane.xlu0 %4253 }
0x127f   :  { %6006 = vrcp.f32 %v4254_v9 }
0x1282   :  { %v4257_v5 = vpop.xlane.xlu1 %4256 }
0x1283   :  { %6008 = vrcp.f32 %v4257_v5 }
0x1286   :  { %v4260_v62 = vpop.xlane.xlu0 %4259 }
0x1287   :  { %6010 = vrcp.f32 %v4260_v62 }
0x128a   :  { %v4263_v25 = vpop.xlane.xlu1 %4262 }
0x128b   :  { %6012 = vrcp.f32 %v4263_v25 }
0x128c   :  { %v6007_v7 = vpop.eup %6006 }
0x128d   :  { %v4268_v63 = vmul.f32 %v6007_v7, %v5999_v50 }
0x128f   :  { %v4272_v33 = vpack.c.bf16 %v4268_v63, %v4268_v63 }
0x1290   :  { %v6009_v21 = vpop.eup %6008 }
0x1291   :  { %v4269_v1 = vmul.f32 %v6009_v21, %v6001_v53  ;;  %5783 = vmatmul.mubr.msk.bf16.vlgmr.msra.gmra.mxu1 %vm485_vm4, %v4272_v33 }
0x1292   :  { %5793 = vmatpush3.bf16.msra.mxu1 %v4372_v8  ;;  %5794 = vmatprep.mubr.msk.bf16.mxu1 %vm6037_vm0, %v6036_v22 }
0x1293   :  { %v4273_v23 = vpack.c.bf16 %v4269_v1, %v4269_v1  ;;  %5804 = vmatprep.subr.bf16.mxu1 %v5917_v15 }
0x1294   :  { %v6011_v11 = vpop.eup %6010 }
0x1295   :  { %v4270_v3 = vmul.f32 %v6011_v11, %v6003_v54  ;;  %5789 = vmatmul.mubr.msk.bf16.vlgmr.msra.gmra.mxu0 %vm485_vm4, %v4273_v23 }
0x1296   :  { %5799 = vmatpush3.bf16.msra.mxu0 %v4418_v12  ;;  %5800 = vmatprep.mubr.msk.bf16.mxu0 %vm6037_vm0, %v6036_v22 }
0x1297   :  { %v4274_v13 = vpack.c.bf16 %v4270_v3, %v4270_v3 }
0x1298   :  { %v6013_v17 = vpop.eup %6012 }
0x1299   :  { %v4271_v59 = vmul.f32 %v6013_v17, %v6005_v60  ;;  %5795 = vmatmul.mubr.msk.bf16.vlgmr.msra.gmra.mxu1 %vm485_vm4, %v4274_v13 }
0x129a   :  { %5805 = vmatpush3.bf16.msra.mxu1 %v5917_v15 }
0x129b   :  { %v4275_v14 = vpack.c.bf16 %v4271_v59, %v4271_v59 }
0x129d   :  { %5801 = vmatmul.mubr.msk.bf16.vlgmr.msra.gmra.mxu0 %vm485_vm4, %v4275_v14 }
0x1351   :  { %v4316_v16 = vpop.f32.mrf.mxu1 }
0x1353   :  { %v5784_v0 = vpop.f32.mrf.mxu1 }
0x1355   :  { %v4319_v24 = vpop.f32.mrf.mxu1  ;;  %v4362_v20 = vpop.f32.mrf.mxu0 }
0x1356   :  { %v4460_v18 = vpack.c.bf16 %v4362_v20, %v4316_v16 }
0x1357   :  { %v5785_v22 = vpop.f32.mrf.mxu1  ;;  %v5790_v29 = vpop.f32.mrf.mxu0 }
0x1358   :  { %5806 = vmatprep.mubr.msk.bf16.mxu1 %vm304_vm1, %v4460_v18 }
0x1359   :  { %v4365_v26 = vpop.f32.mrf.mxu0  ;;  %v4408_v28 = vpop.f32.mrf.mxu1 }
0x135b   :  { %v5791_v30 = vpop.f32.mrf.mxu0  ;;  %v5796_v32 = vpop.f32.mrf.mxu1 }
0x135d   :  { %v4411_v34 = vpop.f32.mrf.mxu1  ;;  %v4454_v6 = vpop.f32.mrf.mxu0 }
0x135e   :  { %v4461_v35 = vpack.c.bf16 %v4454_v6, %v4408_v28 }
0x135f   :  { %v5797_v57 = vpop.f32.mrf.mxu1  ;;  %v5802_v37 = vpop.f32.mrf.mxu0 }
0x1360   :  { %5807 = vmatmul.mubr.msk.bf16.vlgmr.msra.gmra.mxu1 %vm304_vm1, %v4461_v35 }
0x1361   :  { %v4457_v38 = vpop.f32.mrf.mxu0 }
0x1363   :  { %v5803_v47 = vpop.f32.mrf.mxu0 }
0x1420   :  { %v5808_v40 = vpop.f32.mrf.mxu1 }
0x1421   :  { %v4528_v41 = vadd.f32 %v5808_v40, %v6856_v51 }
0x1422   :  { %v4511_v61 = vpop.f32.mrf.mxu1 }
0x1423   :  { %v4539_v43 = vadd.f32 %v4963_v4, %v4528_v41  ;;  %v4526_v44 = vadd.f32 %v4511_v61, %v6859_v39 }
0x1424   :  { %v5809_v45 = vpop.f32.mrf.mxu1 }
0x1425   :  { %4543 = vst [vmem:[#allocation2 + $0x10] sm:$0xff] %v4539_v43  ;;  %v4537_v46 = vadd.f32 %v4963_v4, %v4526_v44  ;;  %v4529_v27 = vadd.f32 %v5809_v45, %v6862_v56 }
0x1426   :  { %v4514_v48 = vpop.f32.mrf.mxu1 }
0x1427   :  { %4541 = vst [vmem:[#allocation2] sm:$0xff] %v4537_v46  ;;  %v4540_v49 = vadd.f32 %v4963_v4, %v4529_v27  ;;  %v4527_v19 = vadd.f32 %v4514_v48, %v6865_v58 }
0x1429   :  { %4544 = vst [vmem:[#allocation2 + $0x18] sm:$0xff] %v4540_v49  ;;  %v4538_v55 = vadd.f32 %v4963_v4, %v4527_v19 }
0x142b   :  { %4542 = vst [vmem:[#allocation2 + $0x8] sm:$0xff] %v4538_v55 }
0x142c   :  { %6025 = shalt.err (!%p6022_p4)
}
0x142d   :  { %s6040_s20 = smov 128   ;;  %s6041_s21 = smov 8  }
0x142e   :  { %4556 = dma.vmem_to_hbm [thread:$0]  %s4551_s19, 512, %s6926_s7, [#allocation3], %s6040_s20, %s6040_s20, %s6041_s21  }
0x142f   :  { %6034 = dma.done.wait [#allocation3], 512  }
0x1430   :  { %6035 = vsyncadd [#allocation3], 4294966784 }
0x1431   :  { %4560 = vsyncpa [#allocation3], 1 }

</bundles_post_ra>
